<compile_context>
chip_gen: v6e
topology: v6e:2x2x1
jax: 0.10.0
libtpu: 0.0.40
codegen_flags: <defaults>
</compile_context>

<pallas_src>
import functools

import jax
import jax.numpy as jnp
from jax.experimental import pallas as pl
from jax.experimental.pallas import tpu as pltpu


def lstm_kernel(x2d_ref, wi_ref, wh_ref, b_ref, out_ref, xp_ref,
                *, seq_len, batch, hidden):
    """Whole-sequence LSTM forward in one kernel invocation.

    x2d_ref: (S*B, I)   all timestep inputs, flattened over (S, B)
    wi_ref : (I, 4H)    stacked input->gate weights, gate order [i, f, g, o]
    wh_ref : (H, 4H)    stacked hidden->gate weights
    b_ref  : (1, 4H)    combined (input-bias + hidden-bias) per gate
    out_ref: (S, B, H)  per-step hidden states
    xp_ref : (S*B, 4H)  VMEM scratch: hoisted input projection for all steps
    """
    H = hidden

    # Hoisted, lane-dense input projection for ALL timesteps at once:
    #   (S*B, I) @ (I, 4H) -> (S*B, 4H), bias folded in exactly once.
    xp_ref[...] = (
        jnp.dot(x2d_ref[...], wi_ref[...], preferred_element_type=jnp.float32)
        + b_ref[...]
    )

    wh = wh_ref[...]                     # (H, 4H), resident in vregs/VMEM
    ht = jnp.zeros((batch, H), jnp.float32)
    ct = jnp.zeros((batch, H), jnp.float32)

    # S is small and static -> fully unrolled recurrence; only the single
    # ht @ Wh_stacked matmul per step sits on the serial critical path.
    for t in range(seq_len):
        gates = (xp_ref[pl.ds(t * batch, batch), :]
                 + jnp.dot(ht, wh, preferred_element_type=jnp.float32))
        it = jax.nn.sigmoid(gates[:, 0 * H:1 * H])
        ft = jax.nn.sigmoid(gates[:, 1 * H:2 * H])
        gt = jnp.tanh(gates[:, 2 * H:3 * H])
        ot = jax.nn.sigmoid(gates[:, 3 * H:4 * H])
        ct = ft * ct + it * gt
        ht = ot * jnp.tanh(ct)
        out_ref[t] = ht


@jax.jit
def mylstm1_forward(X, wi, wh, b):
    """X: (S, B, I); wi: (I, 4H); wh: (H, 4H); b: (1, 4H) -> (S, B, H)."""
    S, B, I = X.shape
    H = wh.shape[0]
    x2d = X.reshape(S * B, I)            # free XLA reshape outside the kernel
    kernel = functools.partial(lstm_kernel, seq_len=S, batch=B, hidden=H)
    return pl.pallas_call(
        kernel,
        out_shape=jax.ShapeDtypeStruct((S, B, H), jnp.float32),
        grid_spec=pltpu.PrefetchScalarGridSpec(
            num_scalar_prefetch=0,
            grid=(1,),                   # single invocation; time loop in-kernel
            in_specs=[
                pl.BlockSpec((S * B, I), lambda i: (0, 0)),
                pl.BlockSpec((I, 4 * H), lambda i: (0, 0)),
                pl.BlockSpec((H, 4 * H), lambda i: (0, 0)),
                pl.BlockSpec((1, 4 * H), lambda i: (0, 0)),
            ],
            out_specs=pl.BlockSpec((S, B, H), lambda i: (0, 0, 0)),
            scratch_shapes=[
                pltpu.VMEM((S * B, 4 * H), jnp.float32),   # hoisted x-projection
            ],
        ),
        compiler_params=pltpu.CompilerParams(
            dimension_semantics=("arbitrary",)),   # recurrence is serial
    )(x2d, wi, wh, b)


def _linear_init(key, out_features, in_features):
    """Deterministic nn.Linear-style init: U(-1/sqrt(fan_in), 1/sqrt(fan_in))."""
    kw, kb = jax.random.split(key)
    bound = 1.0 / (in_features ** 0.5)
    w = jax.random.uniform(kw, (out_features, in_features), jnp.float32,
                           -bound, bound)
    bias = jax.random.uniform(kb, (out_features,), jnp.float32, -bound, bound)
    return w, bias


def make_params(key, input_size, hidden_size):
    """Per-gate nn.Linear-style params, gate order [i, f, g, o]."""
    keys = jax.random.split(key, 8)
    w_in, b_in, w_hid, b_hid = [], [], [], []
    for g in range(4):
        wi_g, bi_g = _linear_init(keys[2 * g], hidden_size, input_size)
        wh_g, bh_g = _linear_init(keys[2 * g + 1], hidden_size, hidden_size)
        w_in.append(wi_g)
        b_in.append(bi_g)
        w_hid.append(wh_g)
        b_hid.append(bh_g)
    return w_in, b_in, w_hid, b_hid


def stack_params(w_in, b_in, w_hid, b_hid):
    """Fuse per-gate params into the lane-dense kernel layout (4H last dim)."""
    wi = jnp.concatenate([w.T for w in w_in], axis=1)      # (I, 4H)
    wh = jnp.concatenate([w.T for w in w_hid], axis=1)     # (H, 4H)
    b = jnp.concatenate([bi + bh for bi, bh in zip(b_in, b_hid)])[None, :]  # (1, 4H)
    return wi, wh, b


def reference_forward(X, w_in, b_in, w_hid, b_hid):
    """Pure-JAX reference matching the PyTorch loop semantics exactly."""
    H = w_hid[0].shape[0]
    ht = jnp.zeros((H, H), jnp.float32)
    ct = jnp.zeros((H, H), jnp.float32)
    outs = []
    for x in X:
        it = jax.nn.sigmoid(x @ w_in[0].T + b_in[0] + ht @ w_hid[0].T + b_hid[0])
        ft = jax.nn.sigmoid(x @ w_in[1].T + b_in[1] + ht @ w_hid[1].T + b_hid[1])
        gt = jnp.tanh(x @ w_in[2].T + b_in[2] + ht @ w_hid[2].T + b_hid[2])
        ot = jax.nn.sigmoid(x @ w_in[3].T + b_in[3] + ht @ w_hid[3].T + b_hid[3])
        ct = ft * ct + it * gt
        ht = ot * jnp.tanh(ct)
        outs.append(ht)
    return jnp.stack(outs)


if __name__ == "__main__":
    input_size = 16
    hidden_size = 32
    seq_len = 8
    batch = hidden_size  # forced by the module's (hidden, hidden) state init

    key = jax.random.PRNGKey(0)
    k_params, k_x = jax.random.split(key)
    w_in, b_in, w_hid, b_hid = make_params(k_params, input_size, hidden_size)
    wi, wh, b = stack_params(w_in, b_in, w_hid, b_hid)
    X = jax.random.normal(k_x, (seq_len, batch, input_size), jnp.float32)

    out = jax.block_until_ready(mylstm1_forward(X, wi, wh, b))

    ref = reference_forward(X, w_in, b_in, w_hid, b_hid)
    assert out.shape == (seq_len, hidden_size, hidden_size)
    assert jnp.allclose(out, ref, atol=1e-5, rtol=1e-5), "mismatch vs reference"
    print("KERNEL_OK")
</pallas_src>

<mosaic_0001>
module attributes {stable_mosaic.version = 11 : i64} {
  func.func @lstm_kernel(%arg0: i32, %arg1: memref<256x16xf32, #tpu.memory_space<vmem>>, %arg2: memref<16x128xf32, #tpu.memory_space<vmem>>, %arg3: memref<32x128xf32, #tpu.memory_space<vmem>>, %arg4: memref<1x128xf32, #tpu.memory_space<vmem>>, %arg5: memref<8x32x32xf32, #tpu.memory_space<vmem>>, %arg6: memref<256x128xf32, #tpu.memory_space<vmem>>) attributes {dimension_semantics = [#tpu.dimension_semantics<arbitrary>], iteration_bounds = array<i64: 1>, scalar_prefetch = 0 : i64, scratch_operands = 1 : i64, tpu.core_type = #tpu.core_type<tc>, window_params = [{pipeline_mode = #tpu.pipeline_mode<synchronous>, transform_indices = @transform_0, window_bounds = array<i64: 256, 16>}, {pipeline_mode = #tpu.pipeline_mode<synchronous>, transform_indices = @transform_1, window_bounds = array<i64: 16, 128>}, {pipeline_mode = #tpu.pipeline_mode<synchronous>, transform_indices = @transform_2, window_bounds = array<i64: 32, 128>}, {pipeline_mode = #tpu.pipeline_mode<synchronous>, transform_indices = @transform_3, window_bounds = array<i64: 1, 128>}, {pipeline_mode = #tpu.pipeline_mode<synchronous>, transform_indices = @transform_4, window_bounds = array<i64: 8, 32, 32>}]} {
    %c0 = arith.constant 0 : index
    %c0_0 = arith.constant 0 : index
    %0 = vector.load %arg1[%c0, %c0_0] : memref<256x16xf32, #tpu.memory_space<vmem>>, vector<256x16xf32>
    %c0_1 = arith.constant 0 : index
    %c0_2 = arith.constant 0 : index
    %1 = vector.load %arg2[%c0_1, %c0_2] : memref<16x128xf32, #tpu.memory_space<vmem>>, vector<16x128xf32>
    %cst = arith.constant dense<0.000000e+00> : vector<256x128xf32>
    %2 = tpu.matmul %0, %1, %cst {dimension_numbers = #tpu.dot_dimension_numbers<[1], [0], [0], [1], [0, 0, 1, 1], [], []>} : vector<256x16xf32>, vector<16x128xf32>, vector<256x128xf32> -> vector<256x128xf32>
    %c0_3 = arith.constant 0 : index
    %c0_4 = arith.constant 0 : index
    %3 = vector.load %arg4[%c0_3, %c0_4] : memref<1x128xf32, #tpu.memory_space<vmem>>, vector<1x128xf32>
    %4 = vector.broadcast %3 : vector<1x128xf32> to vector<256x128xf32>
    %5 = arith.addf %2, %4 : vector<256x128xf32>
    %c0_5 = arith.constant 0 : index
    %c0_6 = arith.constant 0 : index
    %6 = vector.load %arg6[%c0_5, %c0_6] : memref<256x128xf32, #tpu.memory_space<vmem>>, vector<256x128xf32>
    tpu.vector_store %arg6[%c0_5, %c0_6], %5 {strides = array<i32>} : memref<256x128xf32, #tpu.memory_space<vmem>>, vector<256x128xf32>,
    %c0_7 = arith.constant 0 : index
    %c0_8 = arith.constant 0 : index
    %7 = vector.load %arg3[%c0_7, %c0_8] : memref<32x128xf32, #tpu.memory_space<vmem>>, vector<32x128xf32>
    %cst_9 = arith.constant 0.000000e+00 : f32
    %8 = vector.broadcast %cst_9 : f32 to vector<32x32xf32>
    %cst_10 = arith.constant 0.000000e+00 : f32
    %9 = vector.broadcast %cst_10 : f32 to vector<32x32xf32>
    %c0_11 = arith.constant 0 : index
    %c0_12 = arith.constant 0 : index
    %10 = vector.load %arg6[%c0_11, %c0_12] : memref<256x128xf32, #tpu.memory_space<vmem>>, vector<32x128xf32>
    %cst_13 = arith.constant dense<0.000000e+00> : vector<32x128xf32>
    %11 = tpu.matmul %8, %7, %cst_13 {dimension_numbers = #tpu.dot_dimension_numbers<[1], [0], [0], [1], [0, 0, 1, 1], [], []>} : vector<32x32xf32>, vector<32x128xf32>, vector<32x128xf32> -> vector<32x128xf32>
    %12 = arith.addf %10, %11 : vector<32x128xf32>
    %13 = vector.extract_strided_slice %12 {offsets = [0, 0], sizes = [32, 32], strides = [1, 1]} : vector<32x128xf32> to vector<32x32xf32>
    %14 = arith.negf %13 : vector<32x32xf32>
    %15 = math.exp %14 : vector<32x32xf32>
    %cst_14 = arith.constant 1.000000e+00 : f32
    %16 = vector.broadcast %cst_14 : f32 to vector<32x32xf32>
    %17 = arith.addf %16, %15 : vector<32x32xf32>
    %18 = arith.divf %16, %17 : vector<32x32xf32>
    %19 = vector.extract_strided_slice %12 {offsets = [0, 32], sizes = [32, 32], strides = [1, 1]} : vector<32x128xf32> to vector<32x32xf32>
    %20 = arith.negf %19 : vector<32x32xf32>
    %21 = math.exp %20 : vector<32x32xf32>
    %cst_15 = arith.constant 1.000000e+00 : f32
    %22 = vector.broadcast %cst_15 : f32 to vector<32x32xf32>
    %23 = arith.addf %22, %21 : vector<32x32xf32>
    %24 = arith.divf %22, %23 : vector<32x32xf32>
    %25 = vector.extract_strided_slice %12 {offsets = [0, 64], sizes = [32, 32], strides = [1, 1]} : vector<32x128xf32> to vector<32x32xf32>
    %26 = math.tanh %25 : vector<32x32xf32>
    %27 = vector.extract_strided_slice %12 {offsets = [0, 96], sizes = [32, 32], strides = [1, 1]} : vector<32x128xf32> to vector<32x32xf32>
    %28 = arith.negf %27 : vector<32x32xf32>
    %29 = math.exp %28 : vector<32x32xf32>
    %cst_16 = arith.constant 1.000000e+00 : f32
    %30 = vector.broadcast %cst_16 : f32 to vector<32x32xf32>
    %31 = arith.addf %30, %29 : vector<32x32xf32>
    %32 = arith.divf %30, %31 : vector<32x32xf32>
    %33 = arith.mulf %24, %9 : vector<32x32xf32>
    %34 = arith.mulf %18, %26 : vector<32x32xf32>
    %35 = arith.addf %33, %34 : vector<32x32xf32>
    %36 = math.tanh %35 : vector<32x32xf32>
    %37 = arith.mulf %32, %36 : vector<32x32xf32>
    %c0_17 = arith.constant 0 : index
    %c0_18 = arith.constant 0 : index
    %c0_19 = arith.constant 0 : index
    %38 = vector.load %arg5[%c0_17, %c0_18, %c0_19] : memref<8x32x32xf32, #tpu.memory_space<vmem>>, vector<1x32x32xf32>
    %39 = vector.shape_cast %38 : vector<1x32x32xf32> to vector<32x32xf32>
    %40 = vector.shape_cast %37 : vector<32x32xf32> to vector<1x32x32xf32>
    tpu.vector_store %arg5[%c0_17, %c0_18, %c0_19], %40 {strides = array<i32>} : memref<8x32x32xf32, #tpu.memory_space<vmem>>, vector<1x32x32xf32>,
    %c32 = arith.constant 32 : index
    %c0_20 = arith.constant 0 : index
    %41 = vector.load %arg6[%c32, %c0_20] : memref<256x128xf32, #tpu.memory_space<vmem>>, vector<32x128xf32>
    %cst_21 = arith.constant dense<0.000000e+00> : vector<32x128xf32>
    %42 = tpu.matmul %37, %7, %cst_21 {dimension_numbers = #tpu.dot_dimension_numbers<[1], [0], [0], [1], [0, 0, 1, 1], [], []>} : vector<32x32xf32>, vector<32x128xf32>, vector<32x128xf32> -> vector<32x128xf32>
    %43 = arith.addf %41, %42 : vector<32x128xf32>
    %44 = vector.extract_strided_slice %43 {offsets = [0, 0], sizes = [32, 32], strides = [1, 1]} : vector<32x128xf32> to vector<32x32xf32>
    %45 = arith.negf %44 : vector<32x32xf32>
    %46 = math.exp %45 : vector<32x32xf32>
    %cst_22 = arith.constant 1.000000e+00 : f32
    %47 = vector.broadcast %cst_22 : f32 to vector<32x32xf32>
    %48 = arith.addf %47, %46 : vector<32x32xf32>
    %49 = arith.divf %47, %48 : vector<32x32xf32>
    %50 = vector.extract_strided_slice %43 {offsets = [0, 32], sizes = [32, 32], strides = [1, 1]} : vector<32x128xf32> to vector<32x32xf32>
    %51 = arith.negf %50 : vector<32x32xf32>
    %52 = math.exp %51 : vector<32x32xf32>
    %cst_23 = arith.constant 1.000000e+00 : f32
    %53 = vector.broadcast %cst_23 : f32 to vector<32x32xf32>
    %54 = arith.addf %53, %52 : vector<32x32xf32>
    %55 = arith.divf %53, %54 : vector<32x32xf32>
    %56 = vector.extract_strided_slice %43 {offsets = [0, 64], sizes = [32, 32], strides = [1, 1]} : vector<32x128xf32> to vector<32x32xf32>
    %57 = math.tanh %56 : vector<32x32xf32>
    %58 = vector.extract_strided_slice %43 {offsets = [0, 96], sizes = [32, 32], strides = [1, 1]} : vector<32x128xf32> to vector<32x32xf32>
    %59 = arith.negf %58 : vector<32x32xf32>
    %60 = math.exp %59 : vector<32x32xf32>
    %cst_24 = arith.constant 1.000000e+00 : f32
    %61 = vector.broadcast %cst_24 : f32 to vector<32x32xf32>
    %62 = arith.addf %61, %60 : vector<32x32xf32>
    %63 = arith.divf %61, %62 : vector<32x32xf32>
    %64 = arith.mulf %55, %35 : vector<32x32xf32>
    %65 = arith.mulf %49, %57 : vector<32x32xf32>
    %66 = arith.addf %64, %65 : vector<32x32xf32>
    %67 = math.tanh %66 : vector<32x32xf32>
    %68 = arith.mulf %63, %67 : vector<32x32xf32>
    %c1 = arith.constant 1 : index
    %c0_25 = arith.constant 0 : index
    %c0_26 = arith.constant 0 : index
    %69 = vector.load %arg5[%c1, %c0_25, %c0_26] : memref<8x32x32xf32, #tpu.memory_space<vmem>>, vector<1x32x32xf32>
    %70 = vector.shape_cast %69 : vector<1x32x32xf32> to vector<32x32xf32>
    %71 = vector.shape_cast %68 : vector<32x32xf32> to vector<1x32x32xf32>
    tpu.vector_store %arg5[%c1, %c0_25, %c0_26], %71 {strides = array<i32>} : memref<8x32x32xf32, #tpu.memory_space<vmem>>, vector<1x32x32xf32>,
    %c64 = arith.constant 64 : index
    %c0_27 = arith.constant 0 : index
    %72 = vector.load %arg6[%c64, %c0_27] : memref<256x128xf32, #tpu.memory_space<vmem>>, vector<32x128xf32>
    %cst_28 = arith.constant dense<0.000000e+00> : vector<32x128xf32>
    %73 = tpu.matmul %68, %7, %cst_28 {dimension_numbers = #tpu.dot_dimension_numbers<[1], [0], [0], [1], [0, 0, 1, 1], [], []>} : vector<32x32xf32>, vector<32x128xf32>, vector<32x128xf32> -> vector<32x128xf32>
    %74 = arith.addf %72, %73 : vector<32x128xf32>
    %75 = vector.extract_strided_slice %74 {offsets = [0, 0], sizes = [32, 32], strides = [1, 1]} : vector<32x128xf32> to vector<32x32xf32>
    %76 = arith.negf %75 : vector<32x32xf32>
    %77 = math.exp %76 : vector<32x32xf32>
    %cst_29 = arith.constant 1.000000e+00 : f32
    %78 = vector.broadcast %cst_29 : f32 to vector<32x32xf32>
    %79 = arith.addf %78, %77 : vector<32x32xf32>
    %80 = arith.divf %78, %79 : vector<32x32xf32>
    %81 = vector.extract_strided_slice %74 {offsets = [0, 32], sizes = [32, 32], strides = [1, 1]} : vector<32x128xf32> to vector<32x32xf32>
    %82 = arith.negf %81 : vector<32x32xf32>
    %83 = math.exp %82 : vector<32x32xf32>
    %cst_30 = arith.constant 1.000000e+00 : f32
    %84 = vector.broadcast %cst_30 : f32 to vector<32x32xf32>
    %85 = arith.addf %84, %83 : vector<32x32xf32>
    %86 = arith.divf %84, %85 : vector<32x32xf32>
    %87 = vector.extract_strided_slice %74 {offsets = [0, 64], sizes = [32, 32], strides = [1, 1]} : vector<32x128xf32> to vector<32x32xf32>
    %88 = math.tanh %87 : vector<32x32xf32>
    %89 = vector.extract_strided_slice %74 {offsets = [0, 96], sizes = [32, 32], strides = [1, 1]} : vector<32x128xf32> to vector<32x32xf32>
    %90 = arith.negf %89 : vector<32x32xf32>
    %91 = math.exp %90 : vector<32x32xf32>
    %cst_31 = arith.constant 1.000000e+00 : f32
    %92 = vector.broadcast %cst_31 : f32 to vector<32x32xf32>
    %93 = arith.addf %92, %91 : vector<32x32xf32>
    %94 = arith.divf %92, %93 : vector<32x32xf32>
    %95 = arith.mulf %86, %66 : vector<32x32xf32>
    %96 = arith.mulf %80, %88 : vector<32x32xf32>
    %97 = arith.addf %95, %96 : vector<32x32xf32>
    %98 = math.tanh %97 : vector<32x32xf32>
    %99 = arith.mulf %94, %98 : vector<32x32xf32>
    %c2 = arith.constant 2 : index
    %c0_32 = arith.constant 0 : index
    %c0_33 = arith.constant 0 : index
    %100 = vector.load %arg5[%c2, %c0_32, %c0_33] : memref<8x32x32xf32, #tpu.memory_space<vmem>>, vector<1x32x32xf32>
    %101 = vector.shape_cast %100 : vector<1x32x32xf32> to vector<32x32xf32>
    %102 = vector.shape_cast %99 : vector<32x32xf32> to vector<1x32x32xf32>
    tpu.vector_store %arg5[%c2, %c0_32, %c0_33], %102 {strides = array<i32>} : memref<8x32x32xf32, #tpu.memory_space<vmem>>, vector<1x32x32xf32>,
    %c96 = arith.constant 96 : index
    %c0_34 = arith.constant 0 : index
    %103 = vector.load %arg6[%c96, %c0_34] : memref<256x128xf32, #tpu.memory_space<vmem>>, vector<32x128xf32>
    %cst_35 = arith.constant dense<0.000000e+00> : vector<32x128xf32>
    %104 = tpu.matmul %99, %7, %cst_35 {dimension_numbers = #tpu.dot_dimension_numbers<[1], [0], [0], [1], [0, 0, 1, 1], [], []>} : vector<32x32xf32>, vector<32x128xf32>, vector<32x128xf32> -> vector<32x128xf32>
    %105 = arith.addf %103, %104 : vector<32x128xf32>
    %106 = vector.extract_strided_slice %105 {offsets = [0, 0], sizes = [32, 32], strides = [1, 1]} : vector<32x128xf32> to vector<32x32xf32>
    %107 = arith.negf %106 : vector<32x32xf32>
    %108 = math.exp %107 : vector<32x32xf32>
    %cst_36 = arith.constant 1.000000e+00 : f32
    %109 = vector.broadcast %cst_36 : f32 to vector<32x32xf32>
    %110 = arith.addf %109, %108 : vector<32x32xf32>
    %111 = arith.divf %109, %110 : vector<32x32xf32>
    %112 = vector.extract_strided_slice %105 {offsets = [0, 32], sizes = [32, 32], strides = [1, 1]} : vector<32x128xf32> to vector<32x32xf32>
    %113 = arith.negf %112 : vector<32x32xf32>
    %114 = math.exp %113 : vector<32x32xf32>
    %cst_37 = arith.constant 1.000000e+00 : f32
    %115 = vector.broadcast %cst_37 : f32 to vector<32x32xf32>
    %116 = arith.addf %115, %114 : vector<32x32xf32>
    %117 = arith.divf %115, %116 : vector<32x32xf32>
    %118 = vector.extract_strided_slice %105 {offsets = [0, 64], sizes = [32, 32], strides = [1, 1]} : vector<32x128xf32> to vector<32x32xf32>
    %119 = math.tanh %118 : vector<32x32xf32>
    %120 = vector.extract_strided_slice %105 {offsets = [0, 96], sizes = [32, 32], strides = [1, 1]} : vector<32x128xf32> to vector<32x32xf32>
    %121 = arith.negf %120 : vector<32x32xf32>
    %122 = math.exp %121 : vector<32x32xf32>
    %cst_38 = arith.constant 1.000000e+00 : f32
    %123 = vector.broadcast %cst_38 : f32 to vector<32x32xf32>
    %124 = arith.addf %123, %122 : vector<32x32xf32>
    %125 = arith.divf %123, %124 : vector<32x32xf32>
    %126 = arith.mulf %117, %97 : vector<32x32xf32>
    %127 = arith.mulf %111, %119 : vector<32x32xf32>
    %128 = arith.addf %126, %127 : vector<32x32xf32>
    %129 = math.tanh %128 : vector<32x32xf32>
    %130 = arith.mulf %125, %129 : vector<32x32xf32>
    %c3 = arith.constant 3 : index
    %c0_39 = arith.constant 0 : index
    %c0_40 = arith.constant 0 : index
    %131 = vector.load %arg5[%c3, %c0_39, %c0_40] : memref<8x32x32xf32, #tpu.memory_space<vmem>>, vector<1x32x32xf32>
    %132 = vector.shape_cast %131 : vector<1x32x32xf32> to vector<32x32xf32>
    %133 = vector.shape_cast %130 : vector<32x32xf32> to vector<1x32x32xf32>
    tpu.vector_store %arg5[%c3, %c0_39, %c0_40], %133 {strides = array<i32>} : memref<8x32x32xf32, #tpu.memory_space<vmem>>, vector<1x32x32xf32>,
    %c128 = arith.constant 128 : index
    %c0_41 = arith.constant 0 : index
    %134 = vector.load %arg6[%c128, %c0_41] : memref<256x128xf32, #tpu.memory_space<vmem>>, vector<32x128xf32>
    %cst_42 = arith.constant dense<0.000000e+00> : vector<32x128xf32>
    %135 = tpu.matmul %130, %7, %cst_42 {dimension_numbers = #tpu.dot_dimension_numbers<[1], [0], [0], [1], [0, 0, 1, 1], [], []>} : vector<32x32xf32>, vector<32x128xf32>, vector<32x128xf32> -> vector<32x128xf32>
    %136 = arith.addf %134, %135 : vector<32x128xf32>
    %137 = vector.extract_strided_slice %136 {offsets = [0, 0], sizes = [32, 32], strides = [1, 1]} : vector<32x128xf32> to vector<32x32xf32>
    %138 = arith.negf %137 : vector<32x32xf32>
    %139 = math.exp %138 : vector<32x32xf32>
    %cst_43 = arith.constant 1.000000e+00 : f32
    %140 = vector.broadcast %cst_43 : f32 to vector<32x32xf32>
    %141 = arith.addf %140, %139 : vector<32x32xf32>
    %142 = arith.divf %140, %141 : vector<32x32xf32>
    %143 = vector.extract_strided_slice %136 {offsets = [0, 32], sizes = [32, 32], strides = [1, 1]} : vector<32x128xf32> to vector<32x32xf32>
    %144 = arith.negf %143 : vector<32x32xf32>
    %145 = math.exp %144 : vector<32x32xf32>
    %cst_44 = arith.constant 1.000000e+00 : f32
    %146 = vector.broadcast %cst_44 : f32 to vector<32x32xf32>
    %147 = arith.addf %146, %145 : vector<32x32xf32>
    %148 = arith.divf %146, %147 : vector<32x32xf32>
    %149 = vector.extract_strided_slice %136 {offsets = [0, 64], sizes = [32, 32], strides = [1, 1]} : vector<32x128xf32> to vector<32x32xf32>
    %150 = math.tanh %149 : vector<32x32xf32>
    %151 = vector.extract_strided_slice %136 {offsets = [0, 96], sizes = [32, 32], strides = [1, 1]} : vector<32x128xf32> to vector<32x32xf32>
    %152 = arith.negf %151 : vector<32x32xf32>
    %153 = math.exp %152 : vector<32x32xf32>
    %cst_45 = arith.constant 1.000000e+00 : f32
    %154 = vector.broadcast %cst_45 : f32 to vector<32x32xf32>
    %155 = arith.addf %154, %153 : vector<32x32xf32>
    %156 = arith.divf %154, %155 : vector<32x32xf32>
    %157 = arith.mulf %148, %128 : vector<32x32xf32>
    %158 = arith.mulf %142, %150 : vector<32x32xf32>
    %159 = arith.addf %157, %158 : vector<32x32xf32>
    %160 = math.tanh %159 : vector<32x32xf32>
    %161 = arith.mulf %156, %160 : vector<32x32xf32>
    %c4 = arith.constant 4 : index
    %c0_46 = arith.constant 0 : index
    %c0_47 = arith.constant 0 : index
    %162 = vector.load %arg5[%c4, %c0_46, %c0_47] : memref<8x32x32xf32, #tpu.memory_space<vmem>>, vector<1x32x32xf32>
    %163 = vector.shape_cast %162 : vector<1x32x32xf32> to vector<32x32xf32>
    %164 = vector.shape_cast %161 : vector<32x32xf32> to vector<1x32x32xf32>
    tpu.vector_store %arg5[%c4, %c0_46, %c0_47], %164 {strides = array<i32>} : memref<8x32x32xf32, #tpu.memory_space<vmem>>, vector<1x32x32xf32>,
    %c160 = arith.constant 160 : index
    %c0_48 = arith.constant 0 : index
    %165 = vector.load %arg6[%c160, %c0_48] : memref<256x128xf32, #tpu.memory_space<vmem>>, vector<32x128xf32>
    %cst_49 = arith.constant dense<0.000000e+00> : vector<32x128xf32>
    %166 = tpu.matmul %161, %7, %cst_49 {dimension_numbers = #tpu.dot_dimension_numbers<[1], [0], [0], [1], [0, 0, 1, 1], [], []>} : vector<32x32xf32>, vector<32x128xf32>, vector<32x128xf32> -> vector<32x128xf32>
    %167 = arith.addf %165, %166 : vector<32x128xf32>
    %168 = vector.extract_strided_slice %167 {offsets = [0, 0], sizes = [32, 32], strides = [1, 1]} : vector<32x128xf32> to vector<32x32xf32>
    %169 = arith.negf %168 : vector<32x32xf32>
    %170 = math.exp %169 : vector<32x32xf32>
    %cst_50 = arith.constant 1.000000e+00 : f32
    %171 = vector.broadcast %cst_50 : f32 to vector<32x32xf32>
    %172 = arith.addf %171, %170 : vector<32x32xf32>
    %173 = arith.divf %171, %172 : vector<32x32xf32>
    %174 = vector.extract_strided_slice %167 {offsets = [0, 32], sizes = [32, 32], strides = [1, 1]} : vector<32x128xf32> to vector<32x32xf32>
    %175 = arith.negf %174 : vector<32x32xf32>
    %176 = math.exp %175 : vector<32x32xf32>
    %cst_51 = arith.constant 1.000000e+00 : f32
    %177 = vector.broadcast %cst_51 : f32 to vector<32x32xf32>
    %178 = arith.addf %177, %176 : vector<32x32xf32>
    %179 = arith.divf %177, %178 : vector<32x32xf32>
    %180 = vector.extract_strided_slice %167 {offsets = [0, 64], sizes = [32, 32], strides = [1, 1]} : vector<32x128xf32> to vector<32x32xf32>
    %181 = math.tanh %180 : vector<32x32xf32>
    %182 = vector.extract_strided_slice %167 {offsets = [0, 96], sizes = [32, 32], strides = [1, 1]} : vector<32x128xf32> to vector<32x32xf32>
    %183 = arith.negf %182 : vector<32x32xf32>
    %184 = math.exp %183 : vector<32x32xf32>
    %cst_52 = arith.constant 1.000000e+00 : f32
    %185 = vector.broadcast %cst_52 : f32 to vector<32x32xf32>
    %186 = arith.addf %185, %184 : vector<32x32xf32>
    %187 = arith.divf %185, %186 : vector<32x32xf32>
    %188 = arith.mulf %179, %159 : vector<32x32xf32>
    %189 = arith.mulf %173, %181 : vector<32x32xf32>
    %190 = arith.addf %188, %189 : vector<32x32xf32>
    %191 = math.tanh %190 : vector<32x32xf32>
    %192 = arith.mulf %187, %191 : vector<32x32xf32>
    %c5 = arith.constant 5 : index
    %c0_53 = arith.constant 0 : index
    %c0_54 = arith.constant 0 : index
    %193 = vector.load %arg5[%c5, %c0_53, %c0_54] : memref<8x32x32xf32, #tpu.memory_space<vmem>>, vector<1x32x32xf32>
    %194 = vector.shape_cast %193 : vector<1x32x32xf32> to vector<32x32xf32>
    %195 = vector.shape_cast %192 : vector<32x32xf32> to vector<1x32x32xf32>
    tpu.vector_store %arg5[%c5, %c0_53, %c0_54], %195 {strides = array<i32>} : memref<8x32x32xf32, #tpu.memory_space<vmem>>, vector<1x32x32xf32>,
    %c192 = arith.constant 192 : index
    %c0_55 = arith.constant 0 : index
    %196 = vector.load %arg6[%c192, %c0_55] : memref<256x128xf32, #tpu.memory_space<vmem>>, vector<32x128xf32>
    %cst_56 = arith.constant dense<0.000000e+00> : vector<32x128xf32>
    %197 = tpu.matmul %192, %7, %cst_56 {dimension_numbers = #tpu.dot_dimension_numbers<[1], [0], [0], [1], [0, 0, 1, 1], [], []>} : vector<32x32xf32>, vector<32x128xf32>, vector<32x128xf32> -> vector<32x128xf32>
    %198 = arith.addf %196, %197 : vector<32x128xf32>
    %199 = vector.extract_strided_slice %198 {offsets = [0, 0], sizes = [32, 32], strides = [1, 1]} : vector<32x128xf32> to vector<32x32xf32>
    %200 = arith.negf %199 : vector<32x32xf32>
    %201 = math.exp %200 : vector<32x32xf32>
    %cst_57 = arith.constant 1.000000e+00 : f32
    %202 = vector.broadcast %cst_57 : f32 to vector<32x32xf32>
    %203 = arith.addf %202, %201 : vector<32x32xf32>
    %204 = arith.divf %202, %203 : vector<32x32xf32>
    %205 = vector.extract_strided_slice %198 {offsets = [0, 32], sizes = [32, 32], strides = [1, 1]} : vector<32x128xf32> to vector<32x32xf32>
    %206 = arith.negf %205 : vector<32x32xf32>
    %207 = math.exp %206 : vector<32x32xf32>
    %cst_58 = arith.constant 1.000000e+00 : f32
    %208 = vector.broadcast %cst_58 : f32 to vector<32x32xf32>
    %209 = arith.addf %208, %207 : vector<32x32xf32>
    %210 = arith.divf %208, %209 : vector<32x32xf32>
    %211 = vector.extract_strided_slice %198 {offsets = [0, 64], sizes = [32, 32], strides = [1, 1]} : vector<32x128xf32> to vector<32x32xf32>
    %212 = math.tanh %211 : vector<32x32xf32>
    %213 = vector.extract_strided_slice %198 {offsets = [0, 96], sizes = [32, 32], strides = [1, 1]} : vector<32x128xf32> to vector<32x32xf32>
    %214 = arith.negf %213 : vector<32x32xf32>
    %215 = math.exp %214 : vector<32x32xf32>
    %cst_59 = arith.constant 1.000000e+00 : f32
    %216 = vector.broadcast %cst_59 : f32 to vector<32x32xf32>
    %217 = arith.addf %216, %215 : vector<32x32xf32>
    %218 = arith.divf %216, %217 : vector<32x32xf32>
    %219 = arith.mulf %210, %190 : vector<32x32xf32>
    %220 = arith.mulf %204, %212 : vector<32x32xf32>
    %221 = arith.addf %219, %220 : vector<32x32xf32>
    %222 = math.tanh %221 : vector<32x32xf32>
    %223 = arith.mulf %218, %222 : vector<32x32xf32>
    %c6 = arith.constant 6 : index
    %c0_60 = arith.constant 0 : index
    %c0_61 = arith.constant 0 : index
    %224 = vector.load %arg5[%c6, %c0_60, %c0_61] : memref<8x32x32xf32, #tpu.memory_space<vmem>>, vector<1x32x32xf32>
    %225 = vector.shape_cast %224 : vector<1x32x32xf32> to vector<32x32xf32>
    %226 = vector.shape_cast %223 : vector<32x32xf32> to vector<1x32x32xf32>
    tpu.vector_store %arg5[%c6, %c0_60, %c0_61], %226 {strides = array<i32>} : memref<8x32x32xf32, #tpu.memory_space<vmem>>, vector<1x32x32xf32>,
    %c224 = arith.constant 224 : index
    %c0_62 = arith.constant 0 : index
    %227 = vector.load %arg6[%c224, %c0_62] : memref<256x128xf32, #tpu.memory_space<vmem>>, vector<32x128xf32>
    %cst_63 = arith.constant dense<0.000000e+00> : vector<32x128xf32>
    %228 = tpu.matmul %223, %7, %cst_63 {dimension_numbers = #tpu.dot_dimension_numbers<[1], [0], [0], [1], [0, 0, 1, 1], [], []>} : vector<32x32xf32>, vector<32x128xf32>, vector<32x128xf32> -> vector<32x128xf32>
    %229 = arith.addf %227, %228 : vector<32x128xf32>
    %230 = vector.extract_strided_slice %229 {offsets = [0, 0], sizes = [32, 32], strides = [1, 1]} : vector<32x128xf32> to vector<32x32xf32>
    %231 = arith.negf %230 : vector<32x32xf32>
    %232 = math.exp %231 : vector<32x32xf32>
    %cst_64 = arith.constant 1.000000e+00 : f32
    %233 = vector.broadcast %cst_64 : f32 to vector<32x32xf32>
    %234 = arith.addf %233, %232 : vector<32x32xf32>
    %235 = arith.divf %233, %234 : vector<32x32xf32>
    %236 = vector.extract_strided_slice %229 {offsets = [0, 32], sizes = [32, 32], strides = [1, 1]} : vector<32x128xf32> to vector<32x32xf32>
    %237 = arith.negf %236 : vector<32x32xf32>
    %238 = math.exp %237 : vector<32x32xf32>
    %cst_65 = arith.constant 1.000000e+00 : f32
    %239 = vector.broadcast %cst_65 : f32 to vector<32x32xf32>
    %240 = arith.addf %239, %238 : vector<32x32xf32>
    %241 = arith.divf %239, %240 : vector<32x32xf32>
    %242 = vector.extract_strided_slice %229 {offsets = [0, 64], sizes = [32, 32], strides = [1, 1]} : vector<32x128xf32> to vector<32x32xf32>
    %243 = math.tanh %242 : vector<32x32xf32>
    %244 = vector.extract_strided_slice %229 {offsets = [0, 96], sizes = [32, 32], strides = [1, 1]} : vector<32x128xf32> to vector<32x32xf32>
    %245 = arith.negf %244 : vector<32x32xf32>
    %246 = math.exp %245 : vector<32x32xf32>
    %cst_66 = arith.constant 1.000000e+00 : f32
    %247 = vector.broadcast %cst_66 : f32 to vector<32x32xf32>
    %248 = arith.addf %247, %246 : vector<32x32xf32>
    %249 = arith.divf %247, %248 : vector<32x32xf32>
    %250 = arith.mulf %241, %221 : vector<32x32xf32>
    %251 = arith.mulf %235, %243 : vector<32x32xf32>
    %252 = arith.addf %250, %251 : vector<32x32xf32>
    %253 = math.tanh %252 : vector<32x32xf32>
    %254 = arith.mulf %249, %253 : vector<32x32xf32>
    %c7 = arith.constant 7 : index
    %c0_67 = arith.constant 0 : index
    %c0_68 = arith.constant 0 : index
    %255 = vector.load %arg5[%c7, %c0_67, %c0_68] : memref<8x32x32xf32, #tpu.memory_space<vmem>>, vector<1x32x32xf32>
    %256 = vector.shape_cast %255 : vector<1x32x32xf32> to vector<32x32xf32>
    %257 = vector.shape_cast %254 : vector<32x32xf32> to vector<1x32x32xf32>
    tpu.vector_store %arg5[%c7, %c0_67, %c0_68], %257 {strides = array<i32>} : memref<8x32x32xf32, #tpu.memory_space<vmem>>, vector<1x32x32xf32>,
    return
  }
  func.func @transform_0(%arg0: i32) -> (i32, i32) {
    %c0_i32 = arith.constant 0 : i32
    %c0_i32_0 = arith.constant 0 : i32
    %c0_i32_1 = arith.constant 0 : i32
    return %c0_i32, %c0_i32_0 : i32, i32
  }
  func.func @transform_1(%arg0: i32) -> (i32, i32) {
    %c0_i32 = arith.constant 0 : i32
    %c0_i32_0 = arith.constant 0 : i32
    %c0_i32_1 = arith.constant 0 : i32
    return %c0_i32, %c0_i32_0 : i32, i32
  }
  func.func @transform_2(%arg0: i32) -> (i32, i32) {
    %c0_i32 = arith.constant 0 : i32
    %c0_i32_0 = arith.constant 0 : i32
    %c0_i32_1 = arith.constant 0 : i32
    return %c0_i32, %c0_i32_0 : i32, i32
  }
  func.func @transform_3(%arg0: i32) -> (i32, i32) {
    %c0_i32 = arith.constant 0 : i32
    %c0_i32_0 = arith.constant 0 : i32
    %c0_i32_1 = arith.constant 0 : i32
    return %c0_i32, %c0_i32_0 : i32, i32
  }
  func.func @transform_4(%arg0: i32) -> (i32, i32, i32) {
    %c0_i32 = arith.constant 0 : i32
    %c0_i32_0 = arith.constant 0 : i32
    %c0_i32_1 = arith.constant 0 : i32
    %c0_i32_2 = arith.constant 0 : i32
    return %c0_i32, %c0_i32_0, %c0_i32_1 : i32, i32, i32
  }
}

</mosaic_0001>

<bundles_post_ra>
// kernel: mylstm1_forward.1
= control target key start
LH: loop header
LB: loop body
LE: loop exit
PB: predicated region body
PF: predicated region fallthrough
CT: control target
= control target key end

     0   :  { %vm59_vm0 = vcmask 130048   ;;  %s3430_s0 = inlined_call_operand.vmem [shape: f32[256,16], index: 0, kind: input, shape index: {}]   ;;  %s3431_s1 = inlined_call_operand.vmem [shape: f32[16,128], index: 1, kind: input, shape index: {}]   ;;  %s3432_s2 = inlined_call_operand.vmem [shape: f32[32,128], index: 2, kind: input, shape index: {}]   ;;  %s3433_s3 = inlined_call_operand.vmem [shape: f32[1,128], index: 3, kind: input, shape index: {}]   ;;  %s3434_s4 = inlined_call_operand.hbm [shape: f32[8,32,32], index: 4, kind: output, shape index: {}]  }
   0x1   :  { %v51_v0 = vld [vmem:[%s3431_s1 + $0x8] sm:$0xff]  ;;  %v2853_v1 = vld [vmem:[%s3432_s2 + $0x18] sm:$0xff]  ;;  %v50_v2 = vld [vmem:[%s3431_s1] sm:$0xff] }
   0x2   :  { %2363 = vmatprep.subr.mxu0 %v51_v0  ;;  %2415 = vmatprep.subr.mxu1 %v2853_v1  ;;  %v2862_v3 = vld [vmem:[%s3432_s2 + $0x10] sm:$0xff]  ;;  %v18_v4 = vld [vmem:[%s3430_s0] sm:$0xff]  ;;  %v19_v5 = vld [vmem:[%s3430_s0 + $0x8] sm:$0xff] }
   0x3   :  { %2364 = vmatpush3.msra.mxu0 %v51_v0  ;;  %2416 = vmatpush3.msra.mxu1 %v2853_v1  ;;  %v2875_v6 = vld [vmem:[%s3432_s2 + $0x8] sm:$0xff]  ;;  %v20_v7 = vld [vmem:[%s3430_s0 + $0x10] sm:$0xff] }
   0x4   :  { %2365 = vmatprep.subr.mxu0 %v50_v2  ;;  %2417 = vmatprep.subr.mxu1 %v2862_v3 }
   0x5   :  { %9 = vsyncpa [#allocation4], 0  ;;  %2366 = vmatpush3.msra.mxu0 %v50_v2  ;;  %2367 = vmatprep.mubr.msk.f32.mxu0 %vm59_vm0, %v18_v4  ;;  %v2886_v8 = vld [vmem:[%s3432_s2] sm:$0xff]  ;;  %v21_v9 = vld [vmem:[%s3430_s0 + $0x18] sm:$0xff]  ;;  %v2816_v10 = vmov 0.0   ;;  %s2817_s10 = smov 64  }
   0x6   :  { %2418 = vmatpush3.msra.mxu1 %v2862_v3  ;;  %2368 = vmatmul.mubr.msk.f32.vlgmr.msra.gmra.mxu0 %vm59_vm0, %v19_v5  ;;  %v2909_v13 = vld [vmem:[%s3433_s3] ss:$0 sm:$0xff]  ;;  %s2818_s11 = smov 32   ;;  %vm421_vm1 = vcmask 261120  }
   0x7   :  { %2419 = vmatprep.subr.mxu1 %v2875_v6  ;;  %2370 = vmatprep.mubr.msk.f32.mxu0 %vm59_vm0, %v20_v7  ;;  %v22_v7 = vld [vmem:[%s3430_s0 + $0x20] sm:$0xff] }
   0x8   :  { %2420 = vmatpush3.msra.mxu1 %v2875_v6  ;;  %2423 = vmatprep.mubr.f32.mxu1 %v2816_v10 }
   0x9   :  { %2421 = vmatprep.subr.mxu1 %v2886_v8 }
   0xa   :  { %2422 = vmatpush3.msra.mxu1 %v2886_v8  ;;  %2371 = vmatmul.mubr.msk.f32.gmra.mxu0 %vm59_vm0, %v21_v9 }
   0xb   :  { %2424 = vmatmul.mubr.f32.vlgmr.msra.gmra.mxu1 %v2816_v10  ;;  %2429 = vmatprep.subr.mxu1 %v2853_v1 }
   0xc   :  { %2426 = vmatprep.mubr.f32.mxu1 %v2816_v10  ;;  %2430 = vmatpush3.msra.mxu1 %v2853_v1 }
   0xd   :  { %2431 = vmatprep.subr.mxu1 %v2862_v3  ;;  %2373 = vmatprep.mubr.msk.f32.mxu0 %vm59_vm0, %v22_v7 }
   0xe   :  { %2432 = vmatpush3.msra.mxu1 %v2862_v3 }
   0xf   :  { %2427 = vmatmul.mubr.f32.gmra.mxu1 %v2816_v10  ;;  %2433 = vmatprep.subr.mxu1 %v2875_v6 }
  0x10   :  { %2434 = vmatpush3.msra.mxu1 %v2875_v6 }
  0x11   :  { %2435 = vmatprep.subr.mxu1 %v2886_v8 }
  0x12   :  { %2436 = vmatpush3.msra.mxu1 %v2886_v8 }
  0x13   :  { %2443 = vmatprep.subr.mxu1 %v2853_v1 }
  0xc6   :  { %v2369_v11 = vpop.f32.mrf.mxu0 }
  0xc7   :  { %v228_v16 = vadd.f32 %v2369_v11, %v2909_v13 }
  0xc8   :  { %v222_v12 = vpop.f32.mrf.mxu0 }
  0xc9   :  { %v223_v17 = vadd.f32 %v2909_v13, %v222_v12 }
  0xca   :  { %v2372_v14 = vpop.f32.mrf.mxu0 }
  0xcb   :  { %v2425_v15 = vpop.f32.mrf.mxu1  ;;  %v238_v24 = vadd.f32 %v2372_v14, %v2909_v13  ;;  %v23_v14 = vld [vmem:[%s3430_s0 + $0x28] sm:$0xff] }
  0xcc   :  { %v232_v18 = vpop.f32.mrf.mxu0  ;;  %v511_v22 = vadd.f32 %v2425_v15, %v228_v16  ;;  %v24_v15 = vld [vmem:[%s3430_s0 + $0x30] sm:$0xff]  ;;  %2374 = vmatmul.mubr.msk.f32.gmra.mxu0 %vm59_vm0, %v23_v14  ;;  %v25_v16 = vld [vmem:[%s3430_s0 + $0x38] sm:$0xff] }
  0xcd   :  { %v491_v19 = vpop.f32.mrf.mxu1  ;;  %v233_v23 = vadd.f32 %v2909_v13, %v232_v18  ;;  %2376 = vmatprep.mubr.msk.f32.mxu0 %vm59_vm0, %v24_v15 }
  0xce   :  { %v510_v20 = vadd.f32 %v491_v19, %v223_v17  ;;  %v2206_v33 = vmul.f32 -1.442695, %v511_v22 }
  0xcf   :  { %v2428_v21 = vpop.f32.mrf.mxu1 }
  0xd0   :  { %2533 = vtanh.f32 %v510_v20  ;;  %v513_v27 = vadd.f32 %v2428_v21, %v238_v24  ;;  %v2205_v32 = vmul.f32 -1.442695, %v510_v20  ;;  %2377 = vmatmul.mubr.msk.f32.gmra.mxu0 %vm59_vm0, %v25_v16 }
  0xd1   :  { %v501_v25 = vpop.f32.mrf.mxu1  ;;  %2535 = vtanh.f32 %v511_v22 }
  0xd2   :  { %v512_v26 = vadd.f32 %v501_v25, %v233_v23  ;;  %v2208_v35 = vmul.f32 -1.442695, %v513_v27 }
  0xd4   :  { %2537 = vtanh.f32 %v512_v26  ;;  %v2207_v34 = vmul.f32 -1.442695, %v512_v26 }
  0xd5   :  { %2539 = vtanh.f32 %v513_v27 }
  0xd6   :  { %2541 = vpow2.f32 %v2205_v32 }
  0xd7   :  { %2543 = vpow2.f32 %v2206_v33 }
  0xd8   :  { %2545 = vpow2.f32 %v2207_v34 }
  0xd9   :  { %2547 = vpow2.f32 %v2208_v35 }
  0xdd   :  { %v2534_v28 = vpop.eup %2533 }
  0xde   :  { %550 = vrot.lane.b32.xlu0 %v2534_v28, %s2817_s10  ;;  %v2536_v29 = vpop.eup %2535 }
  0xe1   :  { %v2538_v30 = vpop.eup %2537 }
  0xe2   :  { %554 = vrot.lane.b32.xlu1 %v2538_v30, %s2817_s10  ;;  %552 = vrot.lane.b32.xlu0 %v2536_v29, %s2817_s10  ;;  %v2540_v31 = vpop.eup %2539 }
  0xe3   :  { %v2542_v36 = vpop.eup %2541 }
  0xe4   :  { %v2544_v37 = vpop.eup %2543  ;;  %v526_v38 = vadd.f32 1.0, %v2542_v36 }
  0xe5   :  { %v2546_v39 = vpop.eup %2545  ;;  %v527_v40 = vadd.f32 1.0, %v2544_v37 }
  0xe6   :  { %556 = vrot.lane.b32.xlu1 %v2540_v31, %s2817_s10  ;;  %2549 = vrcp.f32 %v526_v38  ;;  %v528_v41 = vadd.f32 1.0, %v2546_v39  ;;  %v2548_v42 = vpop.eup %2547 }
  0xe7   :  { %2551 = vrcp.f32 %v527_v40  ;;  %v529_v43 = vadd.f32 1.0, %v2548_v42 }
  0xe8   :  { %2553 = vrcp.f32 %v528_v41 }
  0xe9   :  { %2555 = vrcp.f32 %v529_v43 }
  0xf3   :  { %v2550_v44 = vpop.eup %2549 }
  0xf4   :  { %v2552_v47 = vpop.eup %2551  ;;  %v542_v56 = vmul.f32 0.0, %v2550_v44 }
  0xf5   :  { %v2554_v48 = vpop.eup %2553  ;;  %v543_v59 = vmul.f32 0.0, %v2552_v47 }
  0xf6   :  { %v2556_v53 = vpop.eup %2555  ;;  %v544_v60 = vmul.f32 0.0, %v2554_v48 }
  0xf7   :  { %v545_v2 = vmul.f32 0.0, %v2556_v53 }
 0x150   :  { %v551_v45 = vpop.permute.xlu0 %550 }
 0x151   :  { %v562_v46 = vmul.f32 %v2550_v44, %v551_v45 }
 0x153   :  { %570 = vrot.lane.b32.xlu0 %v562_v46, %s2818_s11 }
 0x154   :  { %v555_v49 = vpop.permute.xlu1 %554  ;;  %v553_v50 = vpop.permute.xlu0 %552 }
 0x155   :  { %v564_v51 = vmul.f32 %v2554_v48, %v555_v49  ;;  %v563_v52 = vmul.f32 %v2552_v47, %v553_v50 }
 0x157   :  { %572 = vrot.lane.b32.xlu1 %v563_v52, %s2818_s11  ;;  %574 = vrot.lane.b32.xlu0 %v564_v51, %s2818_s11 }
 0x158   :  { %v557_v54 = vpop.permute.xlu1 %556 }
 0x159   :  { %v565_v55 = vmul.f32 %v2556_v53, %v557_v54 }
 0x15b   :  { %576 = vrot.lane.b32.xlu1 %v565_v55, %s2818_s11 }
 0x18c   :  { %v2375_v29 = vpop.f32.mrf.mxu0 }
 0x18d   :  { %v248_v31 = vadd.f32 %v2375_v29, %v2909_v13 }
 0x18e   :  { %v242_v30 = vpop.f32.mrf.mxu0 }
 0x18f   :  { %v243_v34 = vadd.f32 %v2909_v13, %v242_v30 }
 0x190   :  { %v2378_v32 = vpop.f32.mrf.mxu0 }
 0x191   :  { %v258_v35 = vadd.f32 %v2378_v32, %v2909_v13  ;;  %v28_v32 = vld [vmem:[%s3430_s0 + $0x50] sm:$0xff] }
 0x192   :  { %v252_v37 = vpop.f32.mrf.mxu0 }
 0x193   :  { %v253_v41 = vadd.f32 %v2909_v13, %v252_v37 }
 0x1c5   :  { %v571_v57 = vpop.permute.xlu0 %570 }
 0x1c6   :  { %v2923_v58 = vadd.f32 %v571_v57, %v542_v56 }
 0x1c8   :  { %2557 = vtanh.f32 %v2923_v58 }
 0x1c9   :  { %v573_v61 = vpop.permute.xlu1 %572  ;;  %v575_v62 = vpop.permute.xlu0 %574 }
 0x1ca   :  { %v2926_v63 = vadd.f32 %v573_v61, %v543_v59  ;;  %v2928_v0 = vadd.f32 %v575_v62, %v544_v60 }
 0x1cc   :  { %2559 = vtanh.f32 %v2926_v63 }
 0x1cd   :  { %2561 = vtanh.f32 %v2928_v0  ;;  %v577_v4 = vpop.permute.xlu1 %576 }
 0x1ce   :  { %v2932_v5 = vadd.f32 %v577_v4, %v545_v2 }
 0x1d0   :  { %2563 = vtanh.f32 %v2932_v5 }
 0x1d5   :  { %v2558_v9 = vpop.eup %2557 }
 0x1d6   :  { %594 = vrot.lane.b32.xlu0 %v2558_v9, %s2817_s10 }
 0x1d9   :  { %v2560_v10 = vpop.eup %2559 }
 0x1da   :  { %v2562_v11 = vpop.eup %2561  ;;  %596 = vrot.lane.b32.xlu1 %v2560_v10, %s2817_s10 }
 0x1db   :  { %598 = vrot.lane.b32.xlu0 %v2562_v11, %s2817_s10 }
 0x1dd   :  { %v2564_v12 = vpop.eup %2563 }
 0x1de   :  { %600 = vrot.lane.b32.xlu1 %v2564_v12, %s2817_s10 }
 0x248   :  { %v595_v17 = vpop.permute.xlu0 %594 }
 0x249   :  { %v606_v18 = vmul.f32 %v2550_v44, %v595_v17 }
 0x24b   :  { %614 = vrot.lane.b32.xlu0 %v606_v18, %s2818_s11 }
 0x24c   :  { %v597_v19 = vpop.permute.xlu1 %596 }
 0x24d   :  { %v607_v20 = vmul.f32 %v2552_v47, %v597_v19  ;;  %v599_v21 = vpop.permute.xlu0 %598 }
 0x24e   :  { %v608_v22 = vmul.f32 %v2554_v48, %v599_v21 }
 0x24f   :  { %616 = vrot.lane.b32.xlu1 %v607_v20, %s2818_s11 }
 0x250   :  { %618 = vrot.lane.b32.xlu0 %v608_v22, %s2818_s11  ;;  %v601_v23 = vpop.permute.xlu1 %600 }
 0x251   :  { %v609_v24 = vmul.f32 %v2556_v53, %v601_v23 }
 0x253   :  { %620 = vrot.lane.b32.xlu1 %v609_v24, %s2818_s11 }
 0x2bd   :  { %v615_v25 = vpop.permute.xlu0 %614 }
 0x2be   :  { %626 = vst.msk [vmem:[#allocation3] sm:$0xff] %vm421_vm1, %v615_v25  ;;  %2437 = vmatprep.mubr.msk.f32.mxu1 %vm421_vm1, %v615_v25 }
 0x2c1   :  { %v617_v26 = vpop.permute.xlu1 %616 }
 0x2c2   :  { %627 = vst.msk [vmem:[#allocation3 + $0x8] sm:$0xff] %vm421_vm1, %v617_v26  ;;  %v619_v27 = vpop.permute.xlu0 %618  ;;  %2438 = vmatmul.mubr.msk.f32.vlgmr.msra.gmra.mxu1 %vm421_vm1, %v617_v26 }
 0x2c3   :  { %628 = vst.msk [vmem:[#allocation3 + $0x10] sm:$0xff] %vm421_vm1, %v619_v27  ;;  %2440 = vmatprep.mubr.msk.f32.mxu1 %vm421_vm1, %v619_v27  ;;  %2444 = vmatpush3.msra.mxu1 %v2853_v1 }
 0x2c4   :  { %2445 = vmatprep.subr.mxu1 %v2862_v3 }
 0x2c5   :  { %v621_v28 = vpop.permute.xlu1 %620  ;;  %2446 = vmatpush3.msra.mxu1 %v2862_v3 }
 0x2c6   :  { %629 = vst.msk [vmem:[#allocation3 + $0x18] sm:$0xff] %vm421_vm1, %v621_v28  ;;  %2441 = vmatmul.mubr.msk.f32.gmra.mxu1 %vm421_vm1, %v621_v28  ;;  %2447 = vmatprep.subr.mxu1 %v2875_v6 }
 0x2c7   :  { %2448 = vmatpush3.msra.mxu1 %v2875_v6 }
 0x2c8   :  { %2449 = vmatprep.subr.mxu1 %v2886_v8 }
 0x2c9   :  { %2450 = vmatpush3.msra.mxu1 %v2886_v8 }
 0x2ca   :  { %2457 = vmatprep.subr.mxu1 %v2853_v1 }
 0x382   :  { %v2439_v33 = vpop.f32.mrf.mxu1 }
 0x383   :  { %v728_v36 = vadd.f32 %v2439_v33, %v248_v31  ;;  %v29_v33 = vld [vmem:[%s3430_s0 + $0x58] sm:$0xff] }
 0x384   :  { %v708_v38 = vpop.f32.mrf.mxu1 }
 0x385   :  { %2565 = vtanh.f32 %v728_v36  ;;  %v727_v39 = vadd.f32 %v708_v38, %v243_v34  ;;  %v2214_v49 = vmul.f32 -1.442695, %v728_v36 }
 0x386   :  { %v2442_v40 = vpop.f32.mrf.mxu1 }
 0x387   :  { %v730_v42 = vadd.f32 %v2442_v40, %v258_v35  ;;  %2567 = vtanh.f32 %v727_v39  ;;  %v2213_v50 = vmul.f32 -1.442695, %v727_v39 }
 0x388   :  { %v718_v43 = vpop.f32.mrf.mxu1 }
 0x389   :  { %v729_v44 = vadd.f32 %v718_v43, %v253_v41  ;;  %2569 = vtanh.f32 %v730_v42  ;;  %v2216_v51 = vmul.f32 -1.442695, %v730_v42 }
 0x38b   :  { %2571 = vtanh.f32 %v729_v44  ;;  %v2215_v52 = vmul.f32 -1.442695, %v729_v44 }
 0x38c   :  { %2573 = vpow2.f32 %v2214_v49 }
 0x38d   :  { %2575 = vpow2.f32 %v2213_v50 }
 0x38e   :  { %2577 = vpow2.f32 %v2216_v51 }
 0x38f   :  { %2579 = vpow2.f32 %v2215_v52 }
 0x392   :  { %v2566_v45 = vpop.eup %2565 }
 0x393   :  { %769 = vrot.lane.b32.xlu1 %v2566_v45, %s2817_s10 }
 0x394   :  { %v2568_v46 = vpop.eup %2567 }
 0x395   :  { %767 = vrot.lane.b32.xlu0 %v2568_v46, %s2817_s10 }
 0x396   :  { %v2570_v47 = vpop.eup %2569 }
 0x397   :  { %773 = vrot.lane.b32.xlu1 %v2570_v47, %s2817_s10 }
 0x398   :  { %v2572_v48 = vpop.eup %2571 }
 0x399   :  { %771 = vrot.lane.b32.xlu0 %v2572_v48, %s2817_s10  ;;  %v2574_v53 = vpop.eup %2573 }
 0x39a   :  { %v2576_v54 = vpop.eup %2575  ;;  %v744_v55 = vadd.f32 1.0, %v2574_v53 }
 0x39b   :  { %v2578_v56 = vpop.eup %2577  ;;  %v743_v57 = vadd.f32 1.0, %v2576_v54 }
 0x39c   :  { %v2580_v59 = vpop.eup %2579  ;;  %2581 = vrcp.f32 %v744_v55  ;;  %v746_v60 = vadd.f32 1.0, %v2578_v56 }
 0x39d   :  { %2583 = vrcp.f32 %v743_v57  ;;  %v745_v61 = vadd.f32 1.0, %v2580_v59 }
 0x39e   :  { %2585 = vrcp.f32 %v746_v60 }
 0x39f   :  { %2587 = vrcp.f32 %v745_v61 }
 0x3a9   :  { %v2582_v62 = vpop.eup %2581 }
 0x3aa   :  { %v2584_v7 = vpop.eup %2583  ;;  %v760_v18 = vmul.f32 %v2582_v62, %v2926_v63 }
 0x3ab   :  { %v2586_v11 = vpop.eup %2585  ;;  %v759_v21 = vmul.f32 %v2584_v7, %v2923_v58  ;;  %v26_v58 = vld [vmem:[%s3430_s0 + $0x40] sm:$0xff] }
 0x3ac   :  { %v2588_v15 = vpop.eup %2587  ;;  %v762_v24 = vmul.f32 %v2586_v11, %v2932_v5  ;;  %v27_v5 = vld [vmem:[%s3430_s0 + $0x48] sm:$0xff]  ;;  %2379 = vmatprep.mubr.msk.f32.mxu0 %vm59_vm0, %v26_v58 }
 0x3ad   :  { %v761_v27 = vmul.f32 %v2588_v15, %v2928_v0  ;;  %2380 = vmatmul.mubr.msk.f32.gmra.mxu0 %vm59_vm0, %v27_v5 }
 0x3ae   :  { %2382 = vmatprep.mubr.msk.f32.mxu0 %vm59_vm0, %v28_v32 }
 0x3b1   :  { %2383 = vmatmul.mubr.msk.f32.gmra.mxu0 %vm59_vm0, %v29_v33 }
 0x405   :  { %v770_v2 = vpop.permute.xlu1 %769 }
 0x406   :  { %v780_v4 = vmul.f32 %v2582_v62, %v770_v2 }
 0x407   :  { %v768_v9 = vpop.permute.xlu0 %767 }
 0x408   :  { %789 = vrot.lane.b32.xlu1 %v780_v4, %s2818_s11  ;;  %v779_v10 = vmul.f32 %v2584_v7, %v768_v9 }
 0x409   :  { %v774_v12 = vpop.permute.xlu1 %773 }
 0x40a   :  { %v782_v14 = vmul.f32 %v2586_v11, %v774_v12  ;;  %787 = vrot.lane.b32.xlu0 %v779_v10, %s2818_s11 }
 0x40b   :  { %v772_v16 = vpop.permute.xlu0 %771 }
 0x40c   :  { %v781_v17 = vmul.f32 %v2588_v15, %v772_v16  ;;  %793 = vrot.lane.b32.xlu1 %v782_v14, %s2818_s11 }
 0x40e   :  { %791 = vrot.lane.b32.xlu0 %v781_v17, %s2818_s11 }
 0x46d   :  { %v2381_v46 = vpop.f32.mrf.mxu0 }
 0x46e   :  { %v268_v48 = vadd.f32 %v2381_v46, %v2909_v13 }
 0x46f   :  { %v262_v47 = vpop.f32.mrf.mxu0 }
 0x470   :  { %v263_v51 = vadd.f32 %v2909_v13, %v262_v47 }
 0x471   :  { %v2384_v49 = vpop.f32.mrf.mxu0 }
 0x472   :  { %v278_v52 = vadd.f32 %v2384_v49, %v2909_v13  ;;  %v32_v49 = vld [vmem:[%s3430_s0 + $0x70] sm:$0xff] }
 0x473   :  { %v272_v54 = vpop.f32.mrf.mxu0 }
 0x474   :  { %v273_v59 = vadd.f32 %v2909_v13, %v272_v54 }
 0x47a   :  { %v790_v19 = vpop.permute.xlu1 %789 }
 0x47b   :  { %v2988_v20 = vadd.f32 %v790_v19, %v760_v18 }
 0x47c   :  { %v788_v22 = vpop.permute.xlu0 %787 }
 0x47d   :  { %2589 = vtanh.f32 %v2988_v20  ;;  %v2992_v23 = vadd.f32 %v788_v22, %v759_v21 }
 0x47e   :  { %v794_v25 = vpop.permute.xlu1 %793 }
 0x47f   :  { %2591 = vtanh.f32 %v2992_v23  ;;  %v2996_v26 = vadd.f32 %v794_v25, %v762_v24 }
 0x480   :  { %v792_v63 = vpop.permute.xlu0 %791 }
 0x481   :  { %2593 = vtanh.f32 %v2996_v26  ;;  %v3000_v28 = vadd.f32 %v792_v63, %v761_v27 }
 0x483   :  { %2595 = vtanh.f32 %v3000_v28 }
 0x48a   :  { %v2590_v0 = vpop.eup %2589 }
 0x48b   :  { %813 = vrot.lane.b32.xlu1 %v2590_v0, %s2817_s10 }
 0x48c   :  { %v2592_v29 = vpop.eup %2591 }
 0x48d   :  { %811 = vrot.lane.b32.xlu0 %v2592_v29, %s2817_s10 }
 0x48e   :  { %v2594_v30 = vpop.eup %2593 }
 0x48f   :  { %817 = vrot.lane.b32.xlu1 %v2594_v30, %s2817_s10 }
 0x490   :  { %v2596_v31 = vpop.eup %2595 }
 0x491   :  { %815 = vrot.lane.b32.xlu0 %v2596_v31, %s2817_s10 }
 0x4fd   :  { %v814_v34 = vpop.permute.xlu1 %813 }
 0x4fe   :  { %v824_v35 = vmul.f32 %v2582_v62, %v814_v34 }
 0x4ff   :  { %v812_v36 = vpop.permute.xlu0 %811 }
 0x500   :  { %833 = vrot.lane.b32.xlu1 %v824_v35, %s2818_s11  ;;  %v823_v37 = vmul.f32 %v2584_v7, %v812_v36 }
 0x501   :  { %v818_v38 = vpop.permute.xlu1 %817 }
 0x502   :  { %v826_v39 = vmul.f32 %v2586_v11, %v818_v38  ;;  %831 = vrot.lane.b32.xlu0 %v823_v37, %s2818_s11 }
 0x503   :  { %v816_v40 = vpop.permute.xlu0 %815 }
 0x504   :  { %v825_v41 = vmul.f32 %v2588_v15, %v816_v40  ;;  %837 = vrot.lane.b32.xlu1 %v826_v39, %s2818_s11 }
 0x506   :  { %835 = vrot.lane.b32.xlu0 %v825_v41, %s2818_s11 }
 0x572   :  { %v834_v42 = vpop.permute.xlu1 %833 }
 0x573   :  { %845 = vst.msk [vmem:[#allocation3 + $0x28] sm:$0xff] %vm421_vm1, %v834_v42 }
 0x574   :  { %v832_v43 = vpop.permute.xlu0 %831 }
 0x575   :  { %844 = vst.msk [vmem:[#allocation3 + $0x20] sm:$0xff] %vm421_vm1, %v832_v43  ;;  %2451 = vmatprep.mubr.msk.f32.mxu1 %vm421_vm1, %v832_v43 }
 0x576   :  { %v838_v44 = vpop.permute.xlu1 %837  ;;  %2452 = vmatmul.mubr.msk.f32.vlgmr.msra.gmra.mxu1 %vm421_vm1, %v834_v42 }
 0x577   :  { %847 = vst.msk [vmem:[#allocation3 + $0x38] sm:$0xff] %vm421_vm1, %v838_v44  ;;  %2458 = vmatpush3.msra.mxu1 %v2853_v1 }
 0x578   :  { %v836_v45 = vpop.permute.xlu0 %835  ;;  %2459 = vmatprep.subr.mxu1 %v2862_v3 }
 0x579   :  { %846 = vst.msk [vmem:[#allocation3 + $0x30] sm:$0xff] %vm421_vm1, %v836_v45  ;;  %2454 = vmatprep.mubr.msk.f32.mxu1 %vm421_vm1, %v836_v45  ;;  %2460 = vmatpush3.msra.mxu1 %v2862_v3 }
 0x57a   :  { %2455 = vmatmul.mubr.msk.f32.gmra.mxu1 %vm421_vm1, %v838_v44  ;;  %2461 = vmatprep.subr.mxu1 %v2875_v6 }
 0x57b   :  { %2462 = vmatpush3.msra.mxu1 %v2875_v6 }
 0x57c   :  { %2463 = vmatprep.subr.mxu1 %v2886_v8 }
 0x57d   :  { %2464 = vmatpush3.msra.mxu1 %v2886_v8 }
 0x57e   :  { %2471 = vmatprep.subr.mxu1 %v2853_v1 }
 0x636   :  { %v2453_v50 = vpop.f32.mrf.mxu1 }
 0x637   :  { %v946_v53 = vadd.f32 %v2453_v50, %v268_v48  ;;  %v33_v50 = vld [vmem:[%s3430_s0 + $0x78] sm:$0xff] }
 0x638   :  { %v926_v55 = vpop.f32.mrf.mxu1 }
 0x639   :  { %2597 = vtanh.f32 %v946_v53  ;;  %v945_v56 = vadd.f32 %v926_v55, %v263_v51  ;;  %v2222_v10 = vmul.f32 -1.442695, %v946_v53 }
 0x63a   :  { %v2456_v57 = vpop.f32.mrf.mxu1 }
 0x63b   :  { %v948_v60 = vadd.f32 %v2456_v57, %v278_v52  ;;  %2599 = vtanh.f32 %v945_v56  ;;  %v2221_v11 = vmul.f32 -1.442695, %v945_v56 }
 0x63c   :  { %v936_v61 = vpop.f32.mrf.mxu1 }
 0x63d   :  { %v947_v62 = vadd.f32 %v936_v61, %v273_v59  ;;  %2601 = vtanh.f32 %v948_v60  ;;  %v2224_v12 = vmul.f32 -1.442695, %v948_v60 }
 0x63f   :  { %2603 = vtanh.f32 %v947_v62  ;;  %v2223_v14 = vmul.f32 -1.442695, %v947_v62 }
 0x640   :  { %2605 = vpow2.f32 %v2222_v10 }
 0x641   :  { %2607 = vpow2.f32 %v2221_v11 }
 0x642   :  { %2609 = vpow2.f32 %v2224_v12 }
 0x643   :  { %2611 = vpow2.f32 %v2223_v14 }
 0x646   :  { %v2598_v2 = vpop.eup %2597 }
 0x647   :  { %987 = vrot.lane.b32.xlu1 %v2598_v2, %s2817_s10 }
 0x648   :  { %v2600_v4 = vpop.eup %2599 }
 0x649   :  { %985 = vrot.lane.b32.xlu0 %v2600_v4, %s2817_s10 }
 0x64a   :  { %v2602_v7 = vpop.eup %2601 }
 0x64b   :  { %991 = vrot.lane.b32.xlu1 %v2602_v7, %s2817_s10 }
 0x64c   :  { %v2604_v9 = vpop.eup %2603 }
 0x64d   :  { %989 = vrot.lane.b32.xlu0 %v2604_v9, %s2817_s10  ;;  %v2606_v15 = vpop.eup %2605 }
 0x64e   :  { %v2608_v16 = vpop.eup %2607  ;;  %v962_v17 = vadd.f32 1.0, %v2606_v15 }
 0x64f   :  { %v2610_v18 = vpop.eup %2609  ;;  %v961_v19 = vadd.f32 1.0, %v2608_v16 }
 0x650   :  { %v2612_v21 = vpop.eup %2611  ;;  %2613 = vrcp.f32 %v962_v17  ;;  %v964_v22 = vadd.f32 1.0, %v2610_v18 }
 0x651   :  { %2615 = vrcp.f32 %v961_v19  ;;  %v963_v24 = vadd.f32 1.0, %v2612_v21 }
 0x652   :  { %2617 = vrcp.f32 %v964_v22 }
 0x653   :  { %2619 = vrcp.f32 %v963_v24 }
 0x65d   :  { %v2614_v25 = vpop.eup %2613 }
 0x65e   :  { %v2616_v58 = vpop.eup %2615  ;;  %v978_v35 = vmul.f32 %v2614_v25, %v2988_v20 }
 0x65f   :  { %v2618_v29 = vpop.eup %2617  ;;  %v977_v38 = vmul.f32 %v2616_v58, %v2992_v23  ;;  %v30_v23 = vld [vmem:[%s3430_s0 + $0x60] sm:$0xff] }
 0x660   :  { %v2620_v32 = vpop.eup %2619  ;;  %v980_v41 = vmul.f32 %v2618_v29, %v2996_v26  ;;  %v31_v26 = vld [vmem:[%s3430_s0 + $0x68] sm:$0xff]  ;;  %2385 = vmatprep.mubr.msk.f32.mxu0 %vm59_vm0, %v30_v23 }
 0x661   :  { %v979_v44 = vmul.f32 %v2620_v32, %v3000_v28  ;;  %2386 = vmatmul.mubr.msk.f32.gmra.mxu0 %vm59_vm0, %v31_v26 }
 0x662   :  { %2388 = vmatprep.mubr.msk.f32.mxu0 %vm59_vm0, %v32_v49 }
 0x665   :  { %2389 = vmatmul.mubr.msk.f32.gmra.mxu0 %vm59_vm0, %v33_v50 }
 0x6b9   :  { %v988_v27 = vpop.permute.xlu1 %987 }
 0x6ba   :  { %v998_v63 = vmul.f32 %v2614_v25, %v988_v27 }
 0x6bb   :  { %v986_v5 = vpop.permute.xlu0 %985 }
 0x6bc   :  { %1007 = vrot.lane.b32.xlu1 %v998_v63, %s2818_s11  ;;  %v997_v0 = vmul.f32 %v2616_v58, %v986_v5 }
 0x6bd   :  { %v992_v30 = vpop.permute.xlu1 %991 }
 0x6be   :  { %v1000_v31 = vmul.f32 %v2618_v29, %v992_v30  ;;  %1005 = vrot.lane.b32.xlu0 %v997_v0, %s2818_s11 }
 0x6bf   :  { %v990_v33 = vpop.permute.xlu0 %989 }
 0x6c0   :  { %v999_v34 = vmul.f32 %v2620_v32, %v990_v33  ;;  %1011 = vrot.lane.b32.xlu1 %v1000_v31, %s2818_s11 }
 0x6c2   :  { %1009 = vrot.lane.b32.xlu0 %v999_v34, %s2818_s11 }
 0x721   :  { %v2387_v4 = vpop.f32.mrf.mxu0 }
 0x722   :  { %v288_v9 = vadd.f32 %v2387_v4, %v2909_v13 }
 0x723   :  { %v282_v7 = vpop.f32.mrf.mxu0 }
 0x725   :  { %v2390_v10 = vpop.f32.mrf.mxu0 }
 0x726   :  { %v298_v12 = vadd.f32 %v2390_v10, %v2909_v13 }
 0x727   :  { %v292_v15 = vpop.f32.mrf.mxu0 }
 0x72e   :  { %v1008_v36 = vpop.permute.xlu1 %1007 }
 0x72f   :  { %v3056_v37 = vadd.f32 %v1008_v36, %v978_v35 }
 0x730   :  { %v1006_v39 = vpop.permute.xlu0 %1005 }
 0x731   :  { %2621 = vtanh.f32 %v3056_v37  ;;  %v3060_v40 = vadd.f32 %v1006_v39, %v977_v38 }
 0x732   :  { %v1012_v42 = vpop.permute.xlu1 %1011 }
 0x733   :  { %2623 = vtanh.f32 %v3060_v40  ;;  %v3064_v43 = vadd.f32 %v1012_v42, %v980_v41 }
 0x734   :  { %v1010_v20 = vpop.permute.xlu0 %1009 }
 0x735   :  { %2625 = vtanh.f32 %v3064_v43  ;;  %v3068_v45 = vadd.f32 %v1010_v20, %v979_v44 }
 0x737   :  { %2627 = vtanh.f32 %v3068_v45 }
 0x73e   :  { %v2622_v28 = vpop.eup %2621 }
 0x73f   :  { %1031 = vrot.lane.b32.xlu1 %v2622_v28, %s2817_s10 }
 0x740   :  { %v2624_v46 = vpop.eup %2623 }
 0x741   :  { %1029 = vrot.lane.b32.xlu0 %v2624_v46, %s2817_s10 }
 0x742   :  { %v2626_v47 = vpop.eup %2625 }
 0x743   :  { %1035 = vrot.lane.b32.xlu1 %v2626_v47, %s2817_s10 }
 0x744   :  { %v2628_v48 = vpop.eup %2627 }
 0x745   :  { %1033 = vrot.lane.b32.xlu0 %v2628_v48, %s2817_s10 }
 0x7b1   :  { %v1032_v51 = vpop.permute.xlu1 %1031 }
 0x7b2   :  { %v1042_v52 = vmul.f32 %v2614_v25, %v1032_v51 }
 0x7b3   :  { %v1030_v53 = vpop.permute.xlu0 %1029 }
 0x7b4   :  { %1051 = vrot.lane.b32.xlu1 %v1042_v52, %s2818_s11  ;;  %v1041_v54 = vmul.f32 %v2616_v58, %v1030_v53 }
 0x7b5   :  { %v1036_v55 = vpop.permute.xlu1 %1035 }
 0x7b6   :  { %v1044_v56 = vmul.f32 %v2618_v29, %v1036_v55  ;;  %1049 = vrot.lane.b32.xlu0 %v1041_v54, %s2818_s11 }
 0x7b7   :  { %v1034_v57 = vpop.permute.xlu0 %1033 }
 0x7b8   :  { %v1043_v59 = vmul.f32 %v2620_v32, %v1034_v57  ;;  %1055 = vrot.lane.b32.xlu1 %v1044_v56, %s2818_s11 }
 0x7ba   :  { %1053 = vrot.lane.b32.xlu0 %v1043_v59, %s2818_s11 }
 0x826   :  { %v1052_v60 = vpop.permute.xlu1 %1051 }
 0x827   :  { %1063 = vst.msk [vmem:[#allocation3 + $0x48] sm:$0xff] %vm421_vm1, %v1052_v60 }
 0x828   :  { %v1050_v61 = vpop.permute.xlu0 %1049 }
 0x829   :  { %1062 = vst.msk [vmem:[#allocation3 + $0x40] sm:$0xff] %vm421_vm1, %v1050_v61  ;;  %2465 = vmatprep.mubr.msk.f32.mxu1 %vm421_vm1, %v1050_v61 }
 0x82a   :  { %v1056_v62 = vpop.permute.xlu1 %1055  ;;  %2466 = vmatmul.mubr.msk.f32.vlgmr.msra.gmra.mxu1 %vm421_vm1, %v1052_v60 }
 0x82b   :  { %1065 = vst.msk [vmem:[#allocation3 + $0x58] sm:$0xff] %vm421_vm1, %v1056_v62  ;;  %2472 = vmatpush3.msra.mxu1 %v2853_v1 }
 0x82c   :  { %v1054_v2 = vpop.permute.xlu0 %1053  ;;  %2473 = vmatprep.subr.mxu1 %v2862_v3 }
 0x82d   :  { %1064 = vst.msk [vmem:[#allocation3 + $0x50] sm:$0xff] %vm421_vm1, %v1054_v2  ;;  %2468 = vmatprep.mubr.msk.f32.mxu1 %vm421_vm1, %v1054_v2  ;;  %2474 = vmatpush3.msra.mxu1 %v2862_v3  ;;  %v283_v3 = vadd.f32 %v2909_v13, %v282_v7  ;;  %v37_v2 = vld [vmem:[%s3430_s0 + $0x98] sm:$0xff] }
 0x82e   :  { %2469 = vmatmul.mubr.msk.f32.gmra.mxu1 %vm421_vm1, %v1056_v62  ;;  %2475 = vmatprep.subr.mxu1 %v2875_v6  ;;  %v36_v62 = vld [vmem:[%s3430_s0 + $0x90] sm:$0xff] }
 0x82f   :  { %2476 = vmatpush3.msra.mxu1 %v2875_v6 }
 0x830   :  { %2477 = vmatprep.subr.mxu1 %v2886_v8 }
 0x831   :  { %2478 = vmatpush3.msra.mxu1 %v2886_v8  ;;  %v293_v8 = vadd.f32 %v2909_v13, %v292_v15 }
 0x832   :  { %2485 = vmatprep.subr.mxu1 %v2853_v1 }
 0x8ea   :  { %v2467_v11 = vpop.f32.mrf.mxu1 }
 0x8eb   :  { %v1164_v14 = vadd.f32 %v2467_v11, %v288_v9 }
 0x8ec   :  { %v1144_v16 = vpop.f32.mrf.mxu1 }
 0x8ed   :  { %2629 = vtanh.f32 %v1164_v14  ;;  %v1163_v6 = vadd.f32 %v1144_v16, %v283_v3  ;;  %v2230_v27 = vmul.f32 -1.442695, %v1164_v14 }
 0x8ee   :  { %v2470_v17 = vpop.f32.mrf.mxu1 }
 0x8ef   :  { %v1166_v18 = vadd.f32 %v2470_v17, %v298_v12  ;;  %2631 = vtanh.f32 %v1163_v6  ;;  %v2229_v13 = vmul.f32 -1.442695, %v1163_v6  ;;  %v3171_v17 = vld [vmem:[%s3432_s2 + $0x18] sm:$0xff] }
 0x8f0   :  { %v1154_v1 = vpop.f32.mrf.mxu1 }
 0x8f1   :  { %v1165_v19 = vadd.f32 %v1154_v1, %v293_v8  ;;  %2633 = vtanh.f32 %v1166_v18  ;;  %v2232_v63 = vmul.f32 -1.442695, %v1166_v18  ;;  %v3177_v18 = vld [vmem:[%s3432_s2 + $0x10] sm:$0xff]  ;;  %v3187_v1 = vld [vmem:[%s3432_s2 + $0x8] sm:$0xff] }
 0x8f3   :  { %2635 = vtanh.f32 %v1165_v19  ;;  %v2231_v58 = vmul.f32 -1.442695, %v1165_v19  ;;  %v3194_v19 = vld [vmem:[%s3432_s2] sm:$0xff] }
 0x8f4   :  { %2637 = vpow2.f32 %v2230_v27 }
 0x8f5   :  { %2639 = vpow2.f32 %v2229_v13 }
 0x8f6   :  { %2641 = vpow2.f32 %v2232_v63 }
 0x8f7   :  { %2643 = vpow2.f32 %v2231_v58 }
 0x8fa   :  { %v2630_v21 = vpop.eup %2629 }
 0x8fb   :  { %1205 = vrot.lane.b32.xlu1 %v2630_v21, %s2817_s10 }
 0x8fc   :  { %v2632_v22 = vpop.eup %2631 }
 0x8fd   :  { %1203 = vrot.lane.b32.xlu0 %v2632_v22, %s2817_s10 }
 0x8fe   :  { %v2634_v24 = vpop.eup %2633 }
 0x8ff   :  { %1209 = vrot.lane.b32.xlu1 %v2634_v24, %s2817_s10  ;;  %v3202_v24 = vld [vmem:[%s3433_s3] ss:$0 sm:$0xff] }
 0x900   :  { %v2636_v25 = vpop.eup %2635 }
 0x901   :  { %1207 = vrot.lane.b32.xlu0 %v2636_v25, %s2817_s10  ;;  %v2638_v5 = vpop.eup %2637 }
 0x902   :  { %v2640_v0 = vpop.eup %2639  ;;  %v1180_v29 = vadd.f32 1.0, %v2638_v5 }
 0x903   :  { %v2642_v30 = vpop.eup %2641  ;;  %v1179_v31 = vadd.f32 1.0, %v2640_v0 }
 0x904   :  { %v2644_v32 = vpop.eup %2643  ;;  %2645 = vrcp.f32 %v1180_v29  ;;  %v1182_v33 = vadd.f32 1.0, %v2642_v30 }
 0x905   :  { %2647 = vrcp.f32 %v1179_v31  ;;  %v1181_v34 = vadd.f32 1.0, %v2644_v32 }
 0x906   :  { %2649 = vrcp.f32 %v1182_v33 }
 0x907   :  { %2651 = vrcp.f32 %v1181_v34 }
 0x911   :  { %v2646_v35 = vpop.eup %2645 }
 0x912   :  { %v2648_v39 = vpop.eup %2647  ;;  %v1196_v47 = vmul.f32 %v2646_v35, %v3056_v37 }
 0x913   :  { %v2650_v44 = vpop.eup %2649  ;;  %v1195_v50 = vmul.f32 %v2648_v39, %v3060_v40  ;;  %v34_v40 = vld [vmem:[%s3430_s0 + $0x80] sm:$0xff] }
 0x914   :  { %v2652_v26 = vpop.eup %2651  ;;  %v1198_v53 = vmul.f32 %v2650_v44, %v3064_v43  ;;  %v35_v43 = vld [vmem:[%s3430_s0 + $0x88] sm:$0xff]  ;;  %2391 = vmatprep.mubr.msk.f32.mxu0 %vm59_vm0, %v34_v40 }
 0x915   :  { %v1197_v56 = vmul.f32 %v2652_v26, %v3068_v45  ;;  %2392 = vmatmul.mubr.msk.f32.gmra.mxu0 %vm59_vm0, %v35_v43 }
 0x916   :  { %2394 = vmatprep.mubr.msk.f32.mxu0 %vm59_vm0, %v36_v62 }
 0x919   :  { %2395 = vmatmul.mubr.msk.f32.gmra.mxu0 %vm59_vm0, %v37_v2 }
 0x96d   :  { %v1206_v36 = vpop.permute.xlu1 %1205 }
 0x96e   :  { %v1216_v38 = vmul.f32 %v2646_v35, %v1206_v36 }
 0x96f   :  { %v1204_v41 = vpop.permute.xlu0 %1203 }
 0x970   :  { %1225 = vrot.lane.b32.xlu1 %v1216_v38, %s2818_s11  ;;  %v1215_v42 = vmul.f32 %v2648_v39, %v1204_v41 }
 0x971   :  { %v1210_v20 = vpop.permute.xlu1 %1209 }
 0x972   :  { %v1218_v23 = vmul.f32 %v2650_v44, %v1210_v20  ;;  %1223 = vrot.lane.b32.xlu0 %v1215_v42, %s2818_s11 }
 0x973   :  { %v1208_v28 = vpop.permute.xlu0 %1207 }
 0x974   :  { %v1217_v46 = vmul.f32 %v2652_v26, %v1208_v28  ;;  %1229 = vrot.lane.b32.xlu1 %v1218_v23, %s2818_s11 }
 0x976   :  { %1227 = vrot.lane.b32.xlu0 %v1217_v46, %s2818_s11 }
 0x9d5   :  { %v2393_v21 = vpop.f32.mrf.mxu0 }
 0x9d6   :  { %v308_v25 = vadd.f32 %v3202_v24, %v2393_v21 }
 0x9d7   :  { %v302_v22 = vpop.f32.mrf.mxu0 }
 0x9d8   :  { %v303_v63 = vadd.f32 %v3202_v24, %v302_v22 }
 0x9d9   :  { %v2396_v27 = vpop.f32.mrf.mxu0 }
 0x9da   :  { %v318_v58 = vadd.f32 %v3202_v24, %v2396_v27  ;;  %v40_v27 = vld [vmem:[%s3430_s0 + $0xb0] sm:$0xff] }
 0x9db   :  { %v312_v0 = vpop.f32.mrf.mxu0 }
 0x9dc   :  { %v313_v32 = vadd.f32 %v3202_v24, %v312_v0 }
 0x9e2   :  { %v1226_v48 = vpop.permute.xlu1 %1225 }
 0x9e3   :  { %v3124_v49 = vadd.f32 %v1226_v48, %v1196_v47 }
 0x9e4   :  { %v1224_v51 = vpop.permute.xlu0 %1223 }
 0x9e5   :  { %2653 = vtanh.f32 %v3124_v49  ;;  %v3128_v52 = vadd.f32 %v1224_v51, %v1195_v50 }
 0x9e6   :  { %v1230_v54 = vpop.permute.xlu1 %1229 }
 0x9e7   :  { %2655 = vtanh.f32 %v3128_v52  ;;  %v3132_v55 = vadd.f32 %v1230_v54, %v1198_v53 }
 0x9e8   :  { %v1228_v37 = vpop.permute.xlu0 %1227 }
 0x9e9   :  { %2657 = vtanh.f32 %v3132_v55  ;;  %v3136_v57 = vadd.f32 %v1228_v37, %v1197_v56 }
 0x9eb   :  { %2659 = vtanh.f32 %v3136_v57 }
 0x9f2   :  { %v2654_v45 = vpop.eup %2653 }
 0x9f3   :  { %1249 = vrot.lane.b32.xlu1 %v2654_v45, %s2817_s10 }
 0x9f4   :  { %v2656_v59 = vpop.eup %2655 }
 0x9f5   :  { %1247 = vrot.lane.b32.xlu0 %v2656_v59, %s2817_s10 }
 0x9f6   :  { %v2658_v60 = vpop.eup %2657 }
 0x9f7   :  { %1253 = vrot.lane.b32.xlu1 %v2658_v60, %s2817_s10 }
 0x9f8   :  { %v2660_v61 = vpop.eup %2659 }
 0x9f9   :  { %1251 = vrot.lane.b32.xlu0 %v2660_v61, %s2817_s10 }
 0xa65   :  { %v1250_v4 = vpop.permute.xlu1 %1249 }
 0xa66   :  { %v1260_v7 = vmul.f32 %v2646_v35, %v1250_v4 }
 0xa67   :  { %v1248_v9 = vpop.permute.xlu0 %1247 }
 0xa68   :  { %1269 = vrot.lane.b32.xlu1 %v1260_v7, %s2818_s11  ;;  %v1259_v10 = vmul.f32 %v2648_v39, %v1248_v9 }
 0xa69   :  { %v1254_v11 = vpop.permute.xlu1 %1253 }
 0xa6a   :  { %v1262_v3 = vmul.f32 %v2650_v44, %v1254_v11  ;;  %1267 = vrot.lane.b32.xlu0 %v1259_v10, %s2818_s11 }
 0xa6b   :  { %v1252_v12 = vpop.permute.xlu0 %1251 }
 0xa6c   :  { %v1261_v14 = vmul.f32 %v2652_v26, %v1252_v12  ;;  %1273 = vrot.lane.b32.xlu1 %v1262_v3, %s2818_s11 }
 0xa6e   :  { %1271 = vrot.lane.b32.xlu0 %v1261_v14, %s2818_s11 }
 0xada   :  { %v1270_v15 = vpop.permute.xlu1 %1269 }
 0xadb   :  { %1281 = vst.msk [vmem:[#allocation3 + $0x68] sm:$0xff] %vm421_vm1, %v1270_v15 }
 0xadc   :  { %v1268_v16 = vpop.permute.xlu0 %1267 }
 0xadd   :  { %1280 = vst.msk [vmem:[#allocation3 + $0x60] sm:$0xff] %vm421_vm1, %v1268_v16  ;;  %2479 = vmatprep.mubr.msk.f32.mxu1 %vm421_vm1, %v1268_v16 }
 0xade   :  { %v1274_v6 = vpop.permute.xlu1 %1273  ;;  %2480 = vmatmul.mubr.msk.f32.vlgmr.msra.gmra.mxu1 %vm421_vm1, %v1270_v15 }
 0xadf   :  { %1283 = vst.msk [vmem:[#allocation3 + $0x78] sm:$0xff] %vm421_vm1, %v1274_v6  ;;  %2486 = vmatpush3.msra.mxu1 %v3171_v17 }
 0xae0   :  { %v1272_v8 = vpop.permute.xlu0 %1271  ;;  %2487 = vmatprep.subr.mxu1 %v3177_v18 }
 0xae1   :  { %1282 = vst.msk [vmem:[#allocation3 + $0x70] sm:$0xff] %vm421_vm1, %v1272_v8  ;;  %2482 = vmatprep.mubr.msk.f32.mxu1 %vm421_vm1, %v1272_v8  ;;  %2488 = vmatpush3.msra.mxu1 %v3177_v18 }
 0xae2   :  { %2483 = vmatmul.mubr.msk.f32.gmra.mxu1 %vm421_vm1, %v1274_v6  ;;  %2489 = vmatprep.subr.mxu1 %v3187_v1 }
 0xae3   :  { %2490 = vmatpush3.msra.mxu1 %v3187_v1 }
 0xae4   :  { %2491 = vmatprep.subr.mxu1 %v3194_v19 }
 0xae5   :  { %2492 = vmatpush3.msra.mxu1 %v3194_v19 }
 0xae6   :  { %2499 = vmatprep.subr.mxu1 %v3171_v17 }
 0xb9e   :  { %v2481_v13 = vpop.f32.mrf.mxu1 }
 0xb9f   :  { %v1382_v5 = vadd.f32 %v2481_v13, %v308_v25  ;;  %v41_v13 = vld [vmem:[%s3430_s0 + $0xb8] sm:$0xff] }
 0xba0   :  { %v1362_v29 = vpop.f32.mrf.mxu1 }
 0xba1   :  { %2661 = vtanh.f32 %v1382_v5  ;;  %v1381_v30 = vadd.f32 %v1362_v29, %v303_v63  ;;  %v2238_v42 = vmul.f32 -1.442695, %v1382_v5 }
 0xba2   :  { %v2484_v31 = vpop.f32.mrf.mxu1 }
 0xba3   :  { %v1384_v33 = vadd.f32 %v2484_v31, %v318_v58  ;;  %2663 = vtanh.f32 %v1381_v30  ;;  %v2237_v44 = vmul.f32 -1.442695, %v1381_v30 }
 0xba4   :  { %v1372_v34 = vpop.f32.mrf.mxu1 }
 0xba5   :  { %v1383_v35 = vadd.f32 %v1372_v34, %v313_v32  ;;  %2665 = vtanh.f32 %v1384_v33  ;;  %v2240_v20 = vmul.f32 -1.442695, %v1384_v33 }
 0xba7   :  { %2667 = vtanh.f32 %v1383_v35  ;;  %v2239_v23 = vmul.f32 -1.442695, %v1383_v35 }
 0xba8   :  { %2669 = vpow2.f32 %v2238_v42 }
 0xba9   :  { %2671 = vpow2.f32 %v2237_v44 }
 0xbaa   :  { %2673 = vpow2.f32 %v2240_v20 }
 0xbab   :  { %2675 = vpow2.f32 %v2239_v23 }
 0xbae   :  { %v2662_v36 = vpop.eup %2661 }
 0xbaf   :  { %1423 = vrot.lane.b32.xlu1 %v2662_v36, %s2817_s10 }
 0xbb0   :  { %v2664_v38 = vpop.eup %2663 }
 0xbb1   :  { %1421 = vrot.lane.b32.xlu0 %v2664_v38, %s2817_s10 }
 0xbb2   :  { %v2666_v39 = vpop.eup %2665 }
 0xbb3   :  { %1427 = vrot.lane.b32.xlu1 %v2666_v39, %s2817_s10 }
 0xbb4   :  { %v2668_v41 = vpop.eup %2667 }
 0xbb5   :  { %1425 = vrot.lane.b32.xlu0 %v2668_v41, %s2817_s10  ;;  %v2670_v26 = vpop.eup %2669 }
 0xbb6   :  { %v2672_v28 = vpop.eup %2671  ;;  %v1398_v46 = vadd.f32 1.0, %v2670_v26 }
 0xbb7   :  { %v2674_v47 = vpop.eup %2673  ;;  %v1397_v48 = vadd.f32 1.0, %v2672_v28 }
 0xbb8   :  { %v2676_v50 = vpop.eup %2675  ;;  %2677 = vrcp.f32 %v1398_v46  ;;  %v1400_v51 = vadd.f32 1.0, %v2674_v47 }
 0xbb9   :  { %2679 = vrcp.f32 %v1397_v48  ;;  %v1399_v53 = vadd.f32 1.0, %v2676_v50 }
 0xbba   :  { %2681 = vrcp.f32 %v1400_v51 }
 0xbbb   :  { %2683 = vrcp.f32 %v1399_v53 }
 0xbc5   :  { %v2678_v54 = vpop.eup %2677 }
 0xbc6   :  { %v2680_v40 = vpop.eup %2679  ;;  %v1414_v7 = vmul.f32 %v2678_v54, %v3124_v49 }
 0xbc7   :  { %v2682_v59 = vpop.eup %2681  ;;  %v1413_v11 = vmul.f32 %v2680_v40, %v3128_v52  ;;  %v38_v52 = vld [vmem:[%s3430_s0 + $0xa0] sm:$0xff] }
 0xbc8   :  { %v2684_v62 = vpop.eup %2683  ;;  %v1416_v14 = vmul.f32 %v2682_v59, %v3132_v55  ;;  %v39_v55 = vld [vmem:[%s3430_s0 + $0xa8] sm:$0xff]  ;;  %2397 = vmatprep.mubr.msk.f32.mxu0 %vm59_vm0, %v38_v52 }
 0xbc9   :  { %v1415_v6 = vmul.f32 %v2684_v62, %v3136_v57  ;;  %2398 = vmatmul.mubr.msk.f32.gmra.mxu0 %vm59_vm0, %v39_v55 }
 0xbca   :  { %2400 = vmatprep.mubr.msk.f32.mxu0 %vm59_vm0, %v40_v27 }
 0xbcd   :  { %2401 = vmatmul.mubr.msk.f32.gmra.mxu0 %vm59_vm0, %v41_v13 }
 0xc21   :  { %v1424_v56 = vpop.permute.xlu1 %1423 }
 0xc22   :  { %v1434_v37 = vmul.f32 %v2678_v54, %v1424_v56 }
 0xc23   :  { %v1422_v43 = vpop.permute.xlu0 %1421 }
 0xc24   :  { %1443 = vrot.lane.b32.xlu1 %v1434_v37, %s2818_s11  ;;  %v1433_v45 = vmul.f32 %v2680_v40, %v1422_v43 }
 0xc25   :  { %v1428_v60 = vpop.permute.xlu1 %1427 }
 0xc26   :  { %v1436_v61 = vmul.f32 %v2682_v59, %v1428_v60  ;;  %1441 = vrot.lane.b32.xlu0 %v1433_v45, %s2818_s11 }
 0xc27   :  { %v1426_v2 = vpop.permute.xlu0 %1425 }
 0xc28   :  { %v1435_v4 = vmul.f32 %v2684_v62, %v1426_v2  ;;  %1447 = vrot.lane.b32.xlu1 %v1436_v61, %s2818_s11 }
 0xc2a   :  { %1445 = vrot.lane.b32.xlu0 %v1435_v4, %s2818_s11 }
 0xc89   :  { %v2399_v38 = vpop.f32.mrf.mxu0 }
 0xc8a   :  { %v328_v41 = vadd.f32 %v3202_v24, %v2399_v38 }
 0xc8b   :  { %v322_v39 = vpop.f32.mrf.mxu0 }
 0xc8c   :  { %v323_v20 = vadd.f32 %v3202_v24, %v322_v39 }
 0xc8d   :  { %v2402_v42 = vpop.f32.mrf.mxu0 }
 0xc8e   :  { %v338_v23 = vadd.f32 %v3202_v24, %v2402_v42  ;;  %v44_v42 = vld [vmem:[%s3430_s0 + $0xd0] sm:$0xff] }
 0xc8f   :  { %v332_v28 = vpop.f32.mrf.mxu0 }
 0xc90   :  { %v333_v50 = vadd.f32 %v3202_v24, %v332_v28 }
 0xc96   :  { %v1444_v9 = vpop.permute.xlu1 %1443 }
 0xc97   :  { %v3217_v10 = vadd.f32 %v1444_v9, %v1414_v7 }
 0xc98   :  { %v1442_v3 = vpop.permute.xlu0 %1441 }
 0xc99   :  { %2685 = vtanh.f32 %v3217_v10  ;;  %v3221_v12 = vadd.f32 %v1442_v3, %v1413_v11 }
 0xc9a   :  { %v1448_v15 = vpop.permute.xlu1 %1447 }
 0xc9b   :  { %2687 = vtanh.f32 %v3221_v12  ;;  %v3225_v16 = vadd.f32 %v1448_v15, %v1416_v14 }
 0xc9c   :  { %v1446_v49 = vpop.permute.xlu0 %1445 }
 0xc9d   :  { %2689 = vtanh.f32 %v3225_v16  ;;  %v3229_v8 = vadd.f32 %v1446_v49, %v1415_v6 }
 0xc9f   :  { %2691 = vtanh.f32 %v3229_v8 }
 0xca6   :  { %v2686_v57 = vpop.eup %2685 }
 0xca7   :  { %1467 = vrot.lane.b32.xlu1 %v2686_v57, %s2817_s10 }
 0xca8   :  { %v2688_v21 = vpop.eup %2687 }
 0xca9   :  { %1465 = vrot.lane.b32.xlu0 %v2688_v21, %s2817_s10 }
 0xcaa   :  { %v2690_v22 = vpop.eup %2689 }
 0xcab   :  { %1471 = vrot.lane.b32.xlu1 %v2690_v22, %s2817_s10 }
 0xcac   :  { %v2692_v25 = vpop.eup %2691 }
 0xcad   :  { %1469 = vrot.lane.b32.xlu0 %v2692_v25, %s2817_s10 }
 0xd19   :  { %v1468_v63 = vpop.permute.xlu1 %1467 }
 0xd1a   :  { %v1478_v58 = vmul.f32 %v2678_v54, %v1468_v63 }
 0xd1b   :  { %v1466_v5 = vpop.permute.xlu0 %1465 }
 0xd1c   :  { %1487 = vrot.lane.b32.xlu1 %v1478_v58, %s2818_s11  ;;  %v1477_v0 = vmul.f32 %v2680_v40, %v1466_v5 }
 0xd1d   :  { %v1472_v29 = vpop.permute.xlu1 %1471 }
 0xd1e   :  { %v1480_v30 = vmul.f32 %v2682_v59, %v1472_v29  ;;  %1485 = vrot.lane.b32.xlu0 %v1477_v0, %s2818_s11 }
 0xd1f   :  { %v1470_v31 = vpop.permute.xlu0 %1469 }
 0xd20   :  { %v1479_v32 = vmul.f32 %v2684_v62, %v1470_v31  ;;  %1491 = vrot.lane.b32.xlu1 %v1480_v30, %s2818_s11 }
 0xd22   :  { %1489 = vrot.lane.b32.xlu0 %v1479_v32, %s2818_s11 }
 0xd8e   :  { %v1488_v33 = vpop.permute.xlu1 %1487 }
 0xd8f   :  { %1499 = vst.msk [vmem:[#allocation3 + $0x88] sm:$0xff] %vm421_vm1, %v1488_v33 }
 0xd90   :  { %v1486_v34 = vpop.permute.xlu0 %1485 }
 0xd91   :  { %1498 = vst.msk [vmem:[#allocation3 + $0x80] sm:$0xff] %vm421_vm1, %v1486_v34  ;;  %2493 = vmatprep.mubr.msk.f32.mxu1 %vm421_vm1, %v1486_v34 }
 0xd92   :  { %v1492_v35 = vpop.permute.xlu1 %1491  ;;  %2494 = vmatmul.mubr.msk.f32.vlgmr.msra.gmra.mxu1 %vm421_vm1, %v1488_v33 }
 0xd93   :  { %1501 = vst.msk [vmem:[#allocation3 + $0x98] sm:$0xff] %vm421_vm1, %v1492_v35  ;;  %2500 = vmatpush3.msra.mxu1 %v3171_v17 }
 0xd94   :  { %v1490_v36 = vpop.permute.xlu0 %1489  ;;  %2501 = vmatprep.subr.mxu1 %v3177_v18 }
 0xd95   :  { %1500 = vst.msk [vmem:[#allocation3 + $0x90] sm:$0xff] %vm421_vm1, %v1490_v36  ;;  %2496 = vmatprep.mubr.msk.f32.mxu1 %vm421_vm1, %v1490_v36  ;;  %2502 = vmatpush3.msra.mxu1 %v3177_v18 }
 0xd96   :  { %2497 = vmatmul.mubr.msk.f32.gmra.mxu1 %vm421_vm1, %v1492_v35  ;;  %2503 = vmatprep.subr.mxu1 %v3187_v1 }
 0xd97   :  { %2504 = vmatpush3.msra.mxu1 %v3187_v1 }
 0xd98   :  { %2505 = vmatprep.subr.mxu1 %v3194_v19 }
 0xd99   :  { %2506 = vmatpush3.msra.mxu1 %v3194_v19 }
 0xd9a   :  { %2513 = vmatprep.subr.mxu1 %v3171_v17 }
 0xe52   :  { %v2495_v44 = vpop.f32.mrf.mxu1 }
 0xe53   :  { %v1600_v26 = vadd.f32 %v2495_v44, %v328_v41  ;;  %v45_v44 = vld [vmem:[%s3430_s0 + $0xd8] sm:$0xff] }
 0xe54   :  { %v1580_v46 = vpop.f32.mrf.mxu1 }
 0xe55   :  { %2693 = vtanh.f32 %v1600_v26  ;;  %v1599_v47 = vadd.f32 %v1580_v46, %v323_v20  ;;  %v2246_v45 = vmul.f32 -1.442695, %v1600_v26 }
 0xe56   :  { %v2498_v48 = vpop.f32.mrf.mxu1 }
 0xe57   :  { %v1602_v51 = vadd.f32 %v2498_v48, %v338_v23  ;;  %2695 = vtanh.f32 %v1599_v47  ;;  %v2245_v59 = vmul.f32 -1.442695, %v1599_v47 }
 0xe58   :  { %v1590_v53 = vpop.f32.mrf.mxu1 }
 0xe59   :  { %v1601_v54 = vadd.f32 %v1590_v53, %v333_v50  ;;  %2697 = vtanh.f32 %v1602_v51  ;;  %v2248_v60 = vmul.f32 -1.442695, %v1602_v51 }
 0xe5b   :  { %2699 = vtanh.f32 %v1601_v54  ;;  %v2247_v61 = vmul.f32 -1.442695, %v1601_v54 }
 0xe5c   :  { %2701 = vpow2.f32 %v2246_v45 }
 0xe5d   :  { %2703 = vpow2.f32 %v2245_v59 }
 0xe5e   :  { %2705 = vpow2.f32 %v2248_v60 }
 0xe5f   :  { %2707 = vpow2.f32 %v2247_v61 }
 0xe62   :  { %v2694_v56 = vpop.eup %2693 }
 0xe63   :  { %1641 = vrot.lane.b32.xlu1 %v2694_v56, %s2817_s10 }
 0xe64   :  { %v2696_v37 = vpop.eup %2695 }
 0xe65   :  { %1639 = vrot.lane.b32.xlu0 %v2696_v37, %s2817_s10 }
 0xe66   :  { %v2698_v40 = vpop.eup %2697 }
 0xe67   :  { %1645 = vrot.lane.b32.xlu1 %v2698_v40, %s2817_s10 }
 0xe68   :  { %v2700_v43 = vpop.eup %2699 }
 0xe69   :  { %1643 = vrot.lane.b32.xlu0 %v2700_v43, %s2817_s10  ;;  %v2702_v62 = vpop.eup %2701 }
 0xe6a   :  { %v2704_v2 = vpop.eup %2703  ;;  %v1616_v4 = vadd.f32 1.0, %v2702_v62 }
 0xe6b   :  { %v2706_v7 = vpop.eup %2705  ;;  %v1615_v9 = vadd.f32 1.0, %v2704_v2 }
 0xe6c   :  { %v2708_v11 = vpop.eup %2707  ;;  %2709 = vrcp.f32 %v1616_v4  ;;  %v1618_v3 = vadd.f32 1.0, %v2706_v7 }
 0xe6d   :  { %2711 = vrcp.f32 %v1615_v9  ;;  %v1617_v14 = vadd.f32 1.0, %v2708_v11 }
 0xe6e   :  { %2713 = vrcp.f32 %v1618_v3 }
 0xe6f   :  { %2715 = vrcp.f32 %v1617_v14 }
 0xe79   :  { %v2710_v15 = vpop.eup %2709 }
 0xe7a   :  { %v2712_v52 = vpop.eup %2711  ;;  %v1632_v58 = vmul.f32 %v2710_v15, %v3217_v10 }
 0xe7b   :  { %v2714_v21 = vpop.eup %2713  ;;  %v1631_v29 = vmul.f32 %v2712_v52, %v3221_v12  ;;  %v42_v12 = vld [vmem:[%s3430_s0 + $0xc0] sm:$0xff] }
 0xe7c   :  { %v2716_v27 = vpop.eup %2715  ;;  %v1634_v32 = vmul.f32 %v2714_v21, %v3225_v16  ;;  %v43_v16 = vld [vmem:[%s3430_s0 + $0xc8] sm:$0xff]  ;;  %2403 = vmatprep.mubr.msk.f32.mxu0 %vm59_vm0, %v42_v12 }
 0xe7d   :  { %v1633_v35 = vmul.f32 %v2716_v27, %v3229_v8  ;;  %2404 = vmatmul.mubr.msk.f32.gmra.mxu0 %vm59_vm0, %v43_v16 }
 0xe7e   :  { %2406 = vmatprep.mubr.msk.f32.mxu0 %vm59_vm0, %v44_v42 }
 0xe81   :  { %2407 = vmatmul.mubr.msk.f32.gmra.mxu0 %vm59_vm0, %v45_v44 }
 0xed5   :  { %v1642_v6 = vpop.permute.xlu1 %1641 }
 0xed6   :  { %v1652_v49 = vmul.f32 %v2710_v15, %v1642_v6 }
 0xed7   :  { %v1640_v55 = vpop.permute.xlu0 %1639 }
 0xed8   :  { %1661 = vrot.lane.b32.xlu1 %v1652_v49, %s2818_s11  ;;  %v1651_v57 = vmul.f32 %v2712_v52, %v1640_v55 }
 0xed9   :  { %v1646_v22 = vpop.permute.xlu1 %1645 }
 0xeda   :  { %v1654_v25 = vmul.f32 %v2714_v21, %v1646_v22  ;;  %1659 = vrot.lane.b32.xlu0 %v1651_v57, %s2818_s11 }
 0xedb   :  { %v1644_v13 = vpop.permute.xlu0 %1643 }
 0xedc   :  { %v1653_v63 = vmul.f32 %v2716_v27, %v1644_v13  ;;  %1665 = vrot.lane.b32.xlu1 %v1654_v25, %s2818_s11 }
 0xede   :  { %1663 = vrot.lane.b32.xlu0 %v1653_v63, %s2818_s11 }
 0xf4a   :  { %v1662_v5 = vpop.permute.xlu1 %1661 }
 0xf4b   :  { %v3285_v0 = vadd.f32 %v1662_v5, %v1632_v58 }
 0xf4c   :  { %v1660_v30 = vpop.permute.xlu0 %1659 }
 0xf4d   :  { %2717 = vtanh.f32 %v3285_v0  ;;  %v3289_v31 = vadd.f32 %v1660_v30, %v1631_v29 }
 0xf4e   :  { %v1666_v33 = vpop.permute.xlu1 %1665 }
 0xf4f   :  { %2719 = vtanh.f32 %v3289_v31  ;;  %v3293_v34 = vadd.f32 %v1666_v33, %v1634_v32 }
 0xf50   :  { %v1664_v10 = vpop.permute.xlu0 %1663 }
 0xf51   :  { %2721 = vtanh.f32 %v3293_v34  ;;  %v3297_v36 = vadd.f32 %v1664_v10, %v1633_v35 }
 0xf53   :  { %2723 = vtanh.f32 %v3297_v36 }
 0xf5a   :  { %v2718_v8 = vpop.eup %2717 }
 0xf5b   :  { %1685 = vrot.lane.b32.xlu1 %v2718_v8, %s2817_s10 }
 0xf5c   :  { %v2720_v38 = vpop.eup %2719 }
 0xf5d   :  { %1683 = vrot.lane.b32.xlu0 %v2720_v38, %s2817_s10 }
 0xf5e   :  { %v2722_v39 = vpop.eup %2721 }
 0xf5f   :  { %1689 = vrot.lane.b32.xlu1 %v2722_v39, %s2817_s10 }
 0xf60   :  { %v2724_v41 = vpop.eup %2723 }
 0xf61   :  { %1687 = vrot.lane.b32.xlu0 %v2724_v41, %s2817_s10 }
 0xfcd   :  { %v1686_v20 = vpop.permute.xlu1 %1685 }
 0xfce   :  { %v1696_v23 = vmul.f32 %v2710_v15, %v1686_v20 }
 0xfcf   :  { %v1684_v26 = vpop.permute.xlu0 %1683 }
 0xfd0   :  { %1705 = vrot.lane.b32.xlu1 %v1696_v23, %s2818_s11  ;;  %v1695_v28 = vmul.f32 %v2712_v52, %v1684_v26 }
 0xfd1   :  { %v1690_v46 = vpop.permute.xlu1 %1689 }
 0xfd2   :  { %v1698_v47 = vmul.f32 %v2714_v21, %v1690_v46  ;;  %1703 = vrot.lane.b32.xlu0 %v1695_v28, %s2818_s11 }
 0xfd3   :  { %v1688_v48 = vpop.permute.xlu0 %1687 }
 0xfd4   :  { %v1697_v50 = vmul.f32 %v2716_v27, %v1688_v48  ;;  %1709 = vrot.lane.b32.xlu1 %v1698_v47, %s2818_s11 }
 0xfd6   :  { %1707 = vrot.lane.b32.xlu0 %v1697_v50, %s2818_s11 }
0x1042   :  { %v1706_v51 = vpop.permute.xlu1 %1705 }
0x1043   :  { %1717 = vst.msk [vmem:[#allocation3 + $0xa8] sm:$0xff] %vm421_vm1, %v1706_v51 }
0x1044   :  { %v1704_v53 = vpop.permute.xlu0 %1703 }
0x1045   :  { %1716 = vst.msk [vmem:[#allocation3 + $0xa0] sm:$0xff] %vm421_vm1, %v1704_v53  ;;  %2507 = vmatprep.mubr.msk.f32.mxu1 %vm421_vm1, %v1704_v53 }
0x1046   :  { %v1710_v54 = vpop.permute.xlu1 %1709  ;;  %2508 = vmatmul.mubr.msk.f32.vlgmr.msra.gmra.mxu1 %vm421_vm1, %v1706_v51 }
0x1047   :  { %1719 = vst.msk [vmem:[#allocation3 + $0xb8] sm:$0xff] %vm421_vm1, %v1710_v54  ;;  %2514 = vmatpush3.msra.mxu1 %v3171_v17  ;;  %v2405_v17 = vpop.f32.mrf.mxu0 }
0x1048   :  { %v1708_v56 = vpop.permute.xlu0 %1707  ;;  %2515 = vmatprep.subr.mxu1 %v3177_v18  ;;  %v348_v40 = vadd.f32 %v3202_v24, %v2405_v17  ;;  %v49_v17 = vld [vmem:[%s3430_s0 + $0xf8] sm:$0xff] }
0x1049   :  { %1718 = vst.msk [vmem:[#allocation3 + $0xb0] sm:$0xff] %vm421_vm1, %v1708_v56  ;;  %2510 = vmatprep.mubr.msk.f32.mxu1 %vm421_vm1, %v1708_v56  ;;  %2516 = vmatpush3.msra.mxu1 %v3177_v18  ;;  %v342_v37 = vpop.f32.mrf.mxu0  ;;  %v48_v56 = vld [vmem:[%s3430_s0 + $0xf0] sm:$0xff] }
0x104a   :  { %2511 = vmatmul.mubr.msk.f32.gmra.mxu1 %vm421_vm1, %v1710_v54  ;;  %2517 = vmatprep.subr.mxu1 %v3187_v1  ;;  %v343_v59 = vadd.f32 %v3202_v24, %v342_v37 }
0x104b   :  { %2518 = vmatpush3.msra.mxu1 %v3187_v1  ;;  %v2408_v43 = vpop.f32.mrf.mxu0 }
0x104c   :  { %2519 = vmatprep.subr.mxu1 %v3194_v19  ;;  %v358_v18 = vadd.f32 %v3202_v24, %v2408_v43 }
0x104d   :  { %2520 = vmatpush3.msra.mxu1 %v3194_v19  ;;  %v352_v61 = vpop.f32.mrf.mxu0 }
0x104e   :  { %v353_v4 = vadd.f32 %v3202_v24, %v352_v61 }
0x1106   :  { %v2509_v45 = vpop.f32.mrf.mxu1 }
0x1107   :  { %v1818_v60 = vadd.f32 %v2509_v45, %v348_v40 }
0x1108   :  { %v1798_v62 = vpop.f32.mrf.mxu1 }
0x1109   :  { %2725 = vtanh.f32 %v1818_v60  ;;  %v1817_v2 = vadd.f32 %v1798_v62, %v343_v59  ;;  %v2254_v6 = vmul.f32 -1.442695, %v1818_v60 }
0x110a   :  { %v2512_v1 = vpop.f32.mrf.mxu1 }
0x110b   :  { %v1820_v7 = vadd.f32 %v2512_v1, %v358_v18  ;;  %2727 = vtanh.f32 %v1817_v2  ;;  %v2253_v49 = vmul.f32 -1.442695, %v1817_v2 }
0x110c   :  { %v1808_v19 = vpop.f32.mrf.mxu1 }
0x110d   :  { %v1819_v9 = vadd.f32 %v1808_v19, %v353_v4  ;;  %2729 = vtanh.f32 %v1820_v7  ;;  %v2256_v52 = vmul.f32 -1.442695, %v1820_v7 }
0x110f   :  { %2731 = vtanh.f32 %v1819_v9  ;;  %v2255_v55 = vmul.f32 -1.442695, %v1819_v9 }
0x1110   :  { %2733 = vpow2.f32 %v2254_v6 }
0x1111   :  { %2735 = vpow2.f32 %v2253_v49 }
0x1112   :  { %2737 = vpow2.f32 %v2256_v52 }
0x1113   :  { %2739 = vpow2.f32 %v2255_v55 }
0x1116   :  { %v2726_v11 = vpop.eup %2725 }
0x1117   :  { %1859 = vrot.lane.b32.xlu1 %v2726_v11, %s2817_s10 }
0x1118   :  { %v2728_v3 = vpop.eup %2727 }
0x1119   :  { %1857 = vrot.lane.b32.xlu0 %v2728_v3, %s2817_s10 }
0x111a   :  { %v2730_v14 = vpop.eup %2729 }
0x111b   :  { %1863 = vrot.lane.b32.xlu1 %v2730_v14, %s2817_s10 }
0x111c   :  { %v2732_v15 = vpop.eup %2731 }
0x111d   :  { %1861 = vrot.lane.b32.xlu0 %v2732_v15, %s2817_s10  ;;  %v2734_v57 = vpop.eup %2733 }
0x111e   :  { %v2736_v21 = vpop.eup %2735  ;;  %v1834_v22 = vadd.f32 1.0, %v2734_v57 }
0x111f   :  { %v2738_v25 = vpop.eup %2737  ;;  %v1833_v27 = vadd.f32 1.0, %v2736_v21 }
0x1120   :  { %v2740_v13 = vpop.eup %2739  ;;  %2741 = vrcp.f32 %v1834_v22  ;;  %v1836_v63 = vadd.f32 1.0, %v2738_v25 }
0x1121   :  { %2743 = vrcp.f32 %v1833_v27  ;;  %v1835_v58 = vadd.f32 1.0, %v2740_v13 }
0x1122   :  { %2745 = vrcp.f32 %v1836_v63 }
0x1123   :  { %2747 = vrcp.f32 %v1835_v58 }
0x112d   :  { %v2742_v5 = vpop.eup %2741 }
0x112e   :  { %v2744_v32 = vpop.eup %2743  ;;  %v1850_v41 = vmul.f32 %v2742_v5, %v3285_v0 }
0x112f   :  { %v2746_v10 = vpop.eup %2745  ;;  %v1849_v20 = vmul.f32 %v2744_v32, %v3289_v31  ;;  %v46_v31 = vld [vmem:[%s3430_s0 + $0xe0] sm:$0xff] }
0x1130   :  { %v2748_v8 = vpop.eup %2747  ;;  %v1852_v28 = vmul.f32 %v2746_v10, %v3293_v34  ;;  %v47_v34 = vld [vmem:[%s3430_s0 + $0xe8] sm:$0xff]  ;;  %2409 = vmatprep.mubr.msk.f32.mxu0 %vm59_vm0, %v46_v31  ;;  %s2819_s0 = smov [#allocation3]  }
0x1131   :  { %v1851_v48 = vmul.f32 %v2748_v8, %v3297_v36  ;;  %2410 = vmatmul.mubr.msk.f32.gmra.mxu0 %vm59_vm0, %v47_v34 }
0x1132   :  { %2412 = vmatprep.mubr.msk.f32.mxu0 %vm59_vm0, %v48_v56 }
0x1135   :  { %2413 = vmatmul.mubr.msk.f32.gmra.mxu0 %vm59_vm0, %v49_v17 }
0x1189   :  { %v1860_v29 = vpop.permute.xlu1 %1859 }
0x118a   :  { %v1870_v30 = vmul.f32 %v2742_v5, %v1860_v29 }
0x118b   :  { %v1858_v33 = vpop.permute.xlu0 %1857 }
0x118c   :  { %1879 = vrot.lane.b32.xlu1 %v1870_v30, %s2818_s11  ;;  %v1869_v35 = vmul.f32 %v2744_v32, %v1858_v33 }
0x118d   :  { %v1864_v12 = vpop.permute.xlu1 %1863 }
0x118e   :  { %v1872_v16 = vmul.f32 %v2746_v10, %v1864_v12  ;;  %1877 = vrot.lane.b32.xlu0 %v1869_v35, %s2818_s11 }
0x118f   :  { %v1862_v38 = vpop.permute.xlu0 %1861 }
0x1190   :  { %v1871_v39 = vmul.f32 %v2748_v8, %v1862_v38  ;;  %1883 = vrot.lane.b32.xlu1 %v1872_v16, %s2818_s11 }
0x1192   :  { %1881 = vrot.lane.b32.xlu0 %v1871_v39, %s2818_s11 }
0x11f1   :  { %v2411_v7 = vpop.f32.mrf.mxu0 }
0x11f2   :  { %v368_v9 = vadd.f32 %v3202_v24, %v2411_v7 }
0x11f3   :  { %v362_v19 = vpop.f32.mrf.mxu0 }
0x11f4   :  { %v363_v14 = vadd.f32 %v3202_v24, %v362_v19 }
0x11f5   :  { %v2414_v11 = vpop.f32.mrf.mxu0 }
0x11f6   :  { %v378_v15 = vadd.f32 %v3202_v24, %v2414_v11 }
0x11f7   :  { %v372_v49 = vpop.f32.mrf.mxu0 }
0x11f8   :  { %v373_v21 = vadd.f32 %v3202_v24, %v372_v49 }
0x11fe   :  { %v1880_v42 = vpop.permute.xlu1 %1879 }
0x11ff   :  { %v3352_v44 = vadd.f32 %v1880_v42, %v1850_v41 }
0x1200   :  { %v1878_v23 = vpop.permute.xlu0 %1877 }
0x1201   :  { %2749 = vtanh.f32 %v3352_v44  ;;  %v3356_v26 = vadd.f32 %v1878_v23, %v1849_v20 }
0x1202   :  { %v1884_v46 = vpop.permute.xlu1 %1883 }
0x1203   :  { %2751 = vtanh.f32 %v3356_v26  ;;  %v3360_v47 = vadd.f32 %v1884_v46, %v1852_v28 }
0x1204   :  { %v1882_v0 = vpop.permute.xlu0 %1881 }
0x1205   :  { %2753 = vtanh.f32 %v3360_v47  ;;  %v3364_v50 = vadd.f32 %v1882_v0, %v1851_v48 }
0x1207   :  { %2755 = vtanh.f32 %v3364_v50 }
0x120e   :  { %v2750_v36 = vpop.eup %2749 }
0x120f   :  { %1903 = vrot.lane.b32.xlu1 %v2750_v36, %s2817_s10 }
0x1210   :  { %v2752_v51 = vpop.eup %2751 }
0x1211   :  { %1901 = vrot.lane.b32.xlu0 %v2752_v51, %s2817_s10 }
0x1212   :  { %v2754_v53 = vpop.eup %2753 }
0x1213   :  { %1907 = vrot.lane.b32.xlu1 %v2754_v53, %s2817_s10 }
0x1214   :  { %v2756_v54 = vpop.eup %2755 }
0x1215   :  { %1905 = vrot.lane.b32.xlu0 %v2756_v54, %s2817_s10 }
0x1281   :  { %v1904_v37 = vpop.permute.xlu1 %1903 }
0x1282   :  { %v1914_v40 = vmul.f32 %v2742_v5, %v1904_v37 }
0x1283   :  { %v1902_v43 = vpop.permute.xlu0 %1901 }
0x1284   :  { %1923 = vrot.lane.b32.xlu1 %v1914_v40, %s2818_s11  ;;  %v1913_v45 = vmul.f32 %v2744_v32, %v1902_v43 }
0x1285   :  { %v1908_v59 = vpop.permute.xlu1 %1907 }
0x1286   :  { %v1916_v18 = vmul.f32 %v2746_v10, %v1908_v59  ;;  %1921 = vrot.lane.b32.xlu0 %v1913_v45, %s2818_s11 }
0x1287   :  { %v1906_v60 = vpop.permute.xlu0 %1905 }
0x1288   :  { %v1915_v61 = vmul.f32 %v2748_v8, %v1906_v60  ;;  %1927 = vrot.lane.b32.xlu1 %v1916_v18, %s2818_s11 }
0x128a   :  { %1925 = vrot.lane.b32.xlu0 %v1915_v61, %s2818_s11 }
0x12f6   :  { %v1924_v62 = vpop.permute.xlu1 %1923 }
0x12f7   :  { %1935 = vst.msk [vmem:[#allocation3 + $0xc8] sm:$0xff] %vm421_vm1, %v1924_v62 }
0x12f8   :  { %v1922_v2 = vpop.permute.xlu0 %1921 }
0x12f9   :  { %1934 = vst.msk [vmem:[#allocation3 + $0xc0] sm:$0xff] %vm421_vm1, %v1922_v2  ;;  %2521 = vmatprep.mubr.msk.f32.mxu1 %vm421_vm1, %v1922_v2 }
0x12fa   :  { %v1928_v1 = vpop.permute.xlu1 %1927  ;;  %2522 = vmatmul.mubr.msk.f32.vlgmr.msra.gmra.mxu1 %vm421_vm1, %v1924_v62 }
0x12fb   :  { %1937 = vst.msk [vmem:[#allocation3 + $0xd8] sm:$0xff] %vm421_vm1, %v1928_v1 }
0x12fc   :  { %v1926_v4 = vpop.permute.xlu0 %1925 }
0x12fd   :  { %1936 = vst.msk [vmem:[#allocation3 + $0xd0] sm:$0xff] %vm421_vm1, %v1926_v4  ;;  %2524 = vmatprep.mubr.msk.f32.mxu1 %vm421_vm1, %v1926_v4 }
0x12fe   :  { %2525 = vmatmul.mubr.msk.f32.gmra.mxu1 %vm421_vm1, %v1928_v1 }
0x13ba   :  { %v2523_v3 = vpop.f32.mrf.mxu1 }
0x13bb   :  { %v2036_v6 = vadd.f32 %v2523_v3, %v368_v9 }
0x13bc   :  { %v2016_v52 = vpop.f32.mrf.mxu1 }
0x13bd   :  { %2757 = vtanh.f32 %v2036_v6  ;;  %v2035_v55 = vadd.f32 %v2016_v52, %v363_v14  ;;  %v2262_v29 = vmul.f32 -1.442695, %v2036_v6 }
0x13be   :  { %v2526_v57 = vpop.f32.mrf.mxu1 }
0x13bf   :  { %v2038_v22 = vadd.f32 %v2526_v57, %v378_v15  ;;  %2759 = vtanh.f32 %v2035_v55  ;;  %v2261_v24 = vmul.f32 -1.442695, %v2035_v55 }
0x13c0   :  { %v2026_v25 = vpop.f32.mrf.mxu1 }
0x13c1   :  { %v2037_v27 = vadd.f32 %v2026_v25, %v373_v21  ;;  %2761 = vtanh.f32 %v2038_v22  ;;  %v2264_v30 = vmul.f32 -1.442695, %v2038_v22 }
0x13c3   :  { %2763 = vtanh.f32 %v2037_v27  ;;  %v2263_v32 = vmul.f32 -1.442695, %v2037_v27 }
0x13c4   :  { %2765 = vpow2.f32 %v2262_v29 }
0x13c5   :  { %2767 = vpow2.f32 %v2261_v24 }
0x13c6   :  { %2769 = vpow2.f32 %v2264_v30 }
0x13c7   :  { %2771 = vpow2.f32 %v2263_v32 }
0x13ca   :  { %v2758_v13 = vpop.eup %2757 }
0x13cb   :  { %2077 = vrot.lane.b32.xlu1 %v2758_v13, %s2817_s10 }
0x13cc   :  { %v2760_v63 = vpop.eup %2759 }
0x13cd   :  { %2075 = vrot.lane.b32.xlu0 %v2760_v63, %s2817_s10 }
0x13ce   :  { %v2762_v58 = vpop.eup %2761 }
0x13cf   :  { %2081 = vrot.lane.b32.xlu1 %v2762_v58, %s2817_s10 }
0x13d0   :  { %v2764_v5 = vpop.eup %2763 }
0x13d1   :  { %2079 = vrot.lane.b32.xlu0 %v2764_v5, %s2817_s10  ;;  %v2766_v33 = vpop.eup %2765 }
0x13d2   :  { %v2768_v35 = vpop.eup %2767  ;;  %v2052_v10 = vadd.f32 1.0, %v2766_v33 }
0x13d3   :  { %v2770_v12 = vpop.eup %2769  ;;  %v2051_v16 = vadd.f32 1.0, %v2768_v35 }
0x13d4   :  { %v2772_v8 = vpop.eup %2771  ;;  %2773 = vrcp.f32 %v2052_v10  ;;  %v2054_v38 = vadd.f32 1.0, %v2770_v12 }
0x13d5   :  { %2775 = vrcp.f32 %v2051_v16  ;;  %v2053_v39 = vadd.f32 1.0, %v2772_v8 }
0x13d6   :  { %2777 = vrcp.f32 %v2054_v38 }
0x13d7   :  { %2779 = vrcp.f32 %v2053_v39 }
0x13e1   :  { %v2774_v41 = vpop.eup %2773 }
0x13e2   :  { %v2776_v23 = vpop.eup %2775  ;;  %v2068_v53 = vmul.f32 %v2774_v41, %v3352_v44 }
0x13e3   :  { %v2778_v48 = vpop.eup %2777  ;;  %v2067_v17 = vmul.f32 %v2776_v23, %v3356_v26 }
0x13e4   :  { %v2780_v34 = vpop.eup %2779  ;;  %v2070_v43 = vmul.f32 %v2778_v48, %v3360_v47 }
0x13e5   :  { %v2069_v18 = vmul.f32 %v2780_v34, %v3364_v50 }
0x143d   :  { %v2078_v42 = vpop.permute.xlu1 %2077 }
0x143e   :  { %v2088_v20 = vmul.f32 %v2774_v41, %v2078_v42 }
0x143f   :  { %v2076_v28 = vpop.permute.xlu0 %2075 }
0x1440   :  { %2097 = vrot.lane.b32.xlu1 %v2088_v20, %s2818_s11  ;;  %v2087_v46 = vmul.f32 %v2776_v23, %v2076_v28 }
0x1441   :  { %v2082_v0 = vpop.permute.xlu1 %2081 }
0x1442   :  { %v2090_v31 = vmul.f32 %v2778_v48, %v2082_v0  ;;  %2095 = vrot.lane.b32.xlu0 %v2087_v46, %s2818_s11 }
0x1443   :  { %v2080_v36 = vpop.permute.xlu0 %2079 }
0x1444   :  { %v2089_v51 = vmul.f32 %v2780_v34, %v2080_v36  ;;  %2101 = vrot.lane.b32.xlu1 %v2090_v31, %s2818_s11 }
0x1446   :  { %2099 = vrot.lane.b32.xlu0 %v2089_v51, %s2818_s11 }
0x14b2   :  { %v2098_v54 = vpop.permute.xlu1 %2097 }
0x14b3   :  { %v2108_v56 = vadd.f32 %v2098_v54, %v2068_v53 }
0x14b4   :  { %v2096_v37 = vpop.permute.xlu0 %2095 }
0x14b5   :  { %2781 = vtanh.f32 %v2108_v56  ;;  %v2107_v40 = vadd.f32 %v2096_v37, %v2067_v17 }
0x14b6   :  { %v2102_v45 = vpop.permute.xlu1 %2101 }
0x14b7   :  { %2783 = vtanh.f32 %v2107_v40  ;;  %v2110_v59 = vadd.f32 %v2102_v45, %v2070_v43 }
0x14b8   :  { %v2100_v60 = vpop.permute.xlu0 %2099 }
0x14b9   :  { %2785 = vtanh.f32 %v2110_v59  ;;  %v2109_v61 = vadd.f32 %v2100_v60, %v2069_v18 }
0x14bb   :  { %2787 = vtanh.f32 %v2109_v61 }
0x14c2   :  { %v2782_v62 = vpop.eup %2781 }
0x14c3   :  { %2121 = vrot.lane.b32.xlu1 %v2782_v62, %s2817_s10 }
0x14c4   :  { %v2784_v44 = vpop.eup %2783 }
0x14c5   :  { %2119 = vrot.lane.b32.xlu0 %v2784_v44, %s2817_s10 }
0x14c6   :  { %v2786_v26 = vpop.eup %2785 }
0x14c7   :  { %2125 = vrot.lane.b32.xlu1 %v2786_v26, %s2817_s10 }
0x14c8   :  { %v2788_v2 = vpop.eup %2787 }
0x14c9   :  { %2123 = vrot.lane.b32.xlu0 %v2788_v2, %s2817_s10  ;;  %s2161_s10 = sshll.u32 %s2819_s0, 4  ;;  %s2162_s10 = int_to_ptr.vmem [resolvable:$true] %s2161_s10 }
0x14ca   :  { %s2794_s26 = scalar_lea.vmem %s2162_s10, 4096  ;;  %p2799_p1 = scmp.lt.s32.totalorder %s2162_s10, %s2162_s10 }
0x14cb   :  { %p2795_p0 = scmp.ne.s32.totalorder %s2162_s10, %s2794_s26  ;;  %p2800_p2 = scmp.lt.s32.totalorder %s2794_s26, %s2794_s26 }
0x14cd   :  { %p2801_p3 = por %p2800_p2, %p2799_p1 }
0x14cf   :  { %p2802_p4 = pnand %p2801_p3, %p2795_p0 }
0x1535   :  { %v2122_v47 = vpop.permute.xlu1 %2121 }
0x1536   :  { %v2132_v1 = vmul.f32 %v2774_v41, %v2122_v47 }
0x1537   :  { %v2120_v4 = vpop.permute.xlu0 %2119 }
0x1538   :  { %2141 = vrot.lane.b32.xlu1 %v2132_v1, %s2818_s11  ;;  %v2131_v50 = vmul.f32 %v2776_v23, %v2120_v4 }
0x1539   :  { %v2126_v7 = vpop.permute.xlu1 %2125 }
0x153a   :  { %v2134_v19 = vmul.f32 %v2778_v48, %v2126_v7  ;;  %2139 = vrot.lane.b32.xlu0 %v2131_v50, %s2818_s11 }
0x153b   :  { %v2124_v9 = vpop.permute.xlu0 %2123 }
0x153c   :  { %v2133_v11 = vmul.f32 %v2780_v34, %v2124_v9  ;;  %2145 = vrot.lane.b32.xlu1 %v2134_v19, %s2818_s11 }
0x153e   :  { %2143 = vrot.lane.b32.xlu0 %v2133_v11, %s2818_s11 }
0x15aa   :  { %v2142_v3 = vpop.permute.xlu1 %2141 }
0x15ab   :  { %2153 = vst.msk [vmem:[#allocation3 + $0xe8] sm:$0xff] %vm421_vm1, %v2142_v3 }
0x15ac   :  { %v2140_v14 = vpop.permute.xlu0 %2139 }
0x15ad   :  { %2152 = vst.msk [vmem:[#allocation3 + $0xe0] sm:$0xff] %vm421_vm1, %v2140_v14 }
0x15ae   :  { %v2146_v15 = vpop.permute.xlu1 %2145 }
0x15af   :  { %2155 = vst.msk [vmem:[#allocation3 + $0xf8] sm:$0xff] %vm421_vm1, %v2146_v15 }
0x15b0   :  { %v2144_v6 = vpop.permute.xlu0 %2143 }
0x15b1   :  { %2154 = vst.msk [vmem:[#allocation3 + $0xf0] sm:$0xff] %vm421_vm1, %v2144_v6 }
0x15b2   :  { %2805 = shalt.err (!%p2802_p4)
}
0x15b3   :  { %s2820_s11 = smov 128   ;;  %s2821_s1 = smov 8  }
0x15b4   :  { %2167 = dma.vmem_to_hbm [thread:$0]  %s2162_s10, 4096, %s3434_s4, [#allocation4], %s2820_s11, %s2820_s11, %s2821_s1  }
0x15b5   :  { %2814 = dma.done.wait [#allocation4], 4096  }
0x15b6   :  { %2815 = vsyncadd [#allocation4], 4294963200 }
0x15b7   :  { %2171 = vsyncpa [#allocation4], 1 }

</bundles_post_ra>
